<compile_context>
chip_gen: v5e
topology: v5e:2x2
jax: 0.10.0
libtpu: 0.0.40
codegen_flags: <defaults>
</compile_context>

<pallas_src>
import functools

import jax
import jax.numpy as jnp
from jax.experimental import pallas as pl
from jax.experimental.pallas import tpu as pltpu

LANE = 128                      # lane-dense padding width for kernel outputs
_VMEM_LIMIT = 56 * 1024 * 1024  # explicit scoped-VMEM cap (< 64 MiB v7x physical)


def _fused_projection_kernel(h_ref, w_ref, b_ref, out_ref):
    # hs = h @ [Wfc | A1 | A2] + [bfc | ab | 0], output padded to 128 lanes.
    out_ref[...] = (jnp.dot(h_ref[...], w_ref[...],
                            preferred_element_type=jnp.float32) + b_ref[...])


def _gat_attention_kernel(s1p_ref, s2t_ref, hw_ref, a_ref, m_ref, out_ref, *,
                          num_heads, out_dim, final):
    s1p = s1p_ref[...]                            # (TM, H) f32, ab folded in
    s2t = s2t_ref[...]                            # (H, Npad) f32
    hw = hw_ref[...].astype(jnp.bfloat16)         # (Npad, D) MXU operand
    A = a_ref[...].astype(jnp.float32)            # (TM, Npad) exact upcast
    M = m_ref[...].astype(jnp.float32)            # (TM, Npad) exact upcast

    # zero the lane-padded output slab once; heads fill static lane slices
    out_ref[...] = jnp.zeros_like(out_ref)

    for hd in range(num_heads):                   # static python loop (8 or 1)
        # e[i,k] = LeakyReLU_0.2(a1.h_i + b + a2.h_k)
        e = s1p[:, hd:hd + 1] + s2t[hd:hd + 1, :]             # (TM, Npad)
        e = jnp.where(e > 0, e, 0.2 * e)
        # sumneighbors_i over all incident edges (if/elif of GATHead.forward)
        denom = jnp.sum(M * e, axis=1, keepdims=True)         # (TM, 1) f32
        denom = jnp.where(denom == 0.0, 1.0, denom)           # isolated nodes
        # out_i = sum_k (#edges i->k) * e[i,k] * fc(h_k), normalized per row
        ho = jnp.dot((A * e).astype(jnp.bfloat16), hw,
                     preferred_element_type=jnp.float32)      # (TM, D)
        ho = ho * pl.reciprocal(denom, approx=True)           # EUP, not VPU div
        if final:
            ho = ho * (1.0 / num_heads)
            ho = ho - jnp.max(ho, axis=1, keepdims=True)      # Softmax(dim=1)
            ex = jnp.exp(ho)
            ho = ex * pl.reciprocal(jnp.sum(ex, axis=1, keepdims=True),
                                    approx=True)
        else:
            ho = jnp.where(ho > 0, ho, jnp.exp(ho) - 1.0)     # ELU
        out_ref[:, hd * out_dim:(hd + 1) * out_dim] = ho


def _plan_rows(n, vmem_budget=40 * 1024 * 1024):
    """Row tile TM (mult. of 8, <=256) and padded node count Npad = k*TM."""
    n8 = ((max(n, 1) + 7) // 8) * 8
    tm = min(256, n8)
    while tm > 8:
        npad = ((n8 + tm - 1) // tm) * tm
        # double-buffered bf16 A/M slabs + f32 e / A*e / M*e temporaries
        if tm * npad * 32 <= vmem_budget:
            break
        tm //= 2
    npad = ((n8 + tm - 1) // tm) * tm
    return tm, npad


def _gat_layer(hp, a16, m16, wfc, bfc, a1, a2, ab, *,
               num_heads, out_dim, final, tm):
    """hp: (Npad, Fin) f32 (pad rows/lanes are zero).  Returns (Npad, 128)."""
    npad, fin = hp.shape
    H, D = num_heads, out_dim
    assert D + 2 * H <= LANE and H * D <= LANE

    # pack fc + both attention projections into one lane-dense matmul
    w_all = jnp.concatenate([wfc, a1, a2], axis=1)            # (Fw, D+2H)
    b_all = jnp.concatenate([bfc, ab, jnp.zeros_like(ab)], axis=1)
    w_all = jnp.pad(w_all, ((0, fin - w_all.shape[0]),
                            (0, LANE - w_all.shape[1])))      # (Fin, 128)
    b_all = jnp.pad(b_all, ((0, 0), (0, LANE - b_all.shape[1])))

    grid = (npad // tm,)
    cparams = pltpu.CompilerParams(dimension_semantics=("parallel",),
                                   vmem_limit_bytes=_VMEM_LIMIT)

    hs = pl.pallas_call(
        _fused_projection_kernel,
        grid=grid,
        in_specs=[pl.BlockSpec((tm, fin), lambda i: (i, 0)),
                  pl.BlockSpec((fin, LANE), lambda i: (0, 0)),
                  pl.BlockSpec((1, LANE), lambda i: (0, 0))],
        out_specs=pl.BlockSpec((tm, LANE), lambda i: (i, 0)),
        out_shape=jax.ShapeDtypeStruct((npad, LANE), jnp.float32),
        compiler_params=cparams,
    )(hp, w_all, b_all)

    hw = hs[:, :D]                       # fc(h_k), shared across heads (Npad,D)
    s1p = hs[:, D:D + H]                 # a1.h_i + b                   (Npad,H)
    s2t = hs[:, D + H:D + 2 * H].T       # a2.h_k -> (H, Npad); layout plumbing

    kernel = functools.partial(_gat_attention_kernel,
                               num_heads=H, out_dim=D, final=final)
    return pl.pallas_call(
        kernel,
        grid=grid,
        in_specs=[pl.BlockSpec((tm, H), lambda i: (i, 0)),       # s1p (tiled)
                  pl.BlockSpec((H, npad), lambda i: (0, 0)),     # s2t (full)
                  pl.BlockSpec((npad, D), lambda i: (0, 0)),     # hw  (full)
                  pl.BlockSpec((tm, npad), lambda i: (i, 0)),    # A rows bf16
                  pl.BlockSpec((tm, npad), lambda i: (i, 0))],   # M rows bf16
        out_specs=pl.BlockSpec((tm, LANE), lambda i: (i, 0)),
        out_shape=jax.ShapeDtypeStruct((npad, LANE), jnp.float32),
        compiler_params=cparams,
    )(s1p, s2t, hw, a16, m16)


def gat_forward(x, edge_index, params):
    """x: (N, F) float32, edge_index: (E, 2) int32 [src, dst]."""
    n = x.shape[0]
    out_dim = params['out_dim']
    tm, npad = _plan_rows(n)

    # dense adjacency + neighbor-multiplicity matrix (plain-JAX glue),
    # zero-padded to (Npad, Npad) and shipped as exact bf16 small integers
    A = jnp.zeros((npad, npad), jnp.float32).at[
        edge_index[:, 0], edge_index[:, 1]].add(1.0)
    M = A + A.T * (1.0 - jnp.eye(npad, dtype=jnp.float32))
    a16 = A.astype(jnp.bfloat16)
    m16 = M.astype(jnp.bfloat16)

    xp = jnp.pad(x, ((0, npad - n), (0, 0)))

    # dropout(p=0.6) on data.x: identity in eval mode
    h1p = _gat_layer(xp, a16, m16,
                     params['l1_wfc'], params['l1_bfc'],
                     params['l1_a1'], params['l1_a2'], params['l1_ab'],
                     num_heads=8, out_dim=8, final=False, tm=tm)
    # dropout on hprime: identity in eval mode.  h1p's pad lanes are zero and
    # layer-2's packed weights have zero rows there, so the 128-lane padded
    # slab feeds the next projection directly (no narrow wrapper slices).
    outp = _gat_layer(h1p, a16, m16,
                      params['l2_wfc'], params['l2_bfc'],
                      params['l2_a1'], params['l2_a2'], params['l2_ab'],
                      num_heads=1, out_dim=out_dim, final=True, tm=tm)
    return outp[:n, :out_dim]


def _xavier_uniform(key, shape):
    fan_out, fan_in = shape                 # torch Linear weight layout (out, in)
    limit = (6.0 / (fan_in + fan_out)) ** 0.5
    return jax.random.uniform(key, shape, jnp.float32, -limit, limit)


def init_params(key, in_dim, out_dim):
    H1, D1 = 8, 8                           # initiallayer: 8 heads, out_dim=8
    F2 = H1 * D1                            # predictionlayer in_dim = 64
    ks = jax.random.split(key, 8)
    w_att1 = _xavier_uniform(ks[0], (H1, 2 * in_dim))          # per-head attnn
    b_att1 = jax.random.uniform(ks[1], (H1,), jnp.float32, -1.0, 1.0) / (2 * in_dim) ** 0.5
    w_fc1 = _xavier_uniform(ks[2], (D1, in_dim))
    b_fc1 = jax.random.uniform(ks[3], (D1,), jnp.float32, -1.0, 1.0) / in_dim ** 0.5
    w_att2 = _xavier_uniform(ks[4], (1, 2 * F2))
    b_att2 = jax.random.uniform(ks[5], (1,), jnp.float32, -1.0, 1.0) / (2 * F2) ** 0.5
    w_fc2 = _xavier_uniform(ks[6], (out_dim, F2))
    b_fc2 = jax.random.uniform(ks[7], (out_dim,), jnp.float32, -1.0, 1.0) / F2 ** 0.5
    return dict(
        l1_a1=w_att1[:, :in_dim].T, l1_a2=w_att1[:, in_dim:].T,
        l1_ab=b_att1.reshape(1, H1),
        l1_wfc=w_fc1.T, l1_bfc=b_fc1.reshape(1, D1),
        l2_a1=w_att2[:, :F2].T, l2_a2=w_att2[:, F2:].T,
        l2_ab=b_att2.reshape(1, 1),
        l2_wfc=w_fc2.T, l2_bfc=b_fc2.reshape(1, out_dim),
        out_dim=out_dim,
    )


if __name__ == "__main__":
    key = jax.random.PRNGKey(0)
    k_x, k_p = jax.random.split(key)

    N, F, OUT = 16, 32, 4
    x = jax.random.normal(k_x, (N, F), jnp.float32)

    # deterministic small graph: ring + a few extra edges + one self loop
    edges = [(i, (i + 1) % N) for i in range(N)]
    edges += [(i, (i + 5) % N) for i in range(0, N, 2)]
    edges += [(0, 0)]
    edge_index = jnp.array(edges, dtype=jnp.int32)               # (25, 2)

    params = init_params(k_p, F, OUT)

    fwd = jax.jit(lambda xx, ee: gat_forward(xx, ee, params))
    out = jax.block_until_ready(fwd(x, edge_index))

    assert out.shape == (N, OUT), out.shape
    assert bool(jnp.all(jnp.isfinite(out)))
    # rows of the final softmax must sum to ~1 (approx-reciprocal epilogue)
    assert bool(jnp.allclose(jnp.sum(out, axis=1), 1.0, atol=1e-2))
    print("KERNEL_OK")
</pallas_src>

<mosaic_0001>
module attributes {stable_mosaic.version = 11 : i64} {
  func.func @_fused_projection_kernel(%arg0: i32, %arg1: memref<16x32xf32, #tpu.memory_space<vmem>>, %arg2: memref<32x128xf32, #tpu.memory_space<vmem>>, %arg3: memref<1x128xf32, #tpu.memory_space<vmem>>, %arg4: memref<16x128xf32, #tpu.memory_space<vmem>>) attributes {dimension_semantics = [#tpu.dimension_semantics<parallel>], iteration_bounds = array<i64: 1>, scalar_prefetch = 0 : i64, scratch_operands = 0 : i64, tpu.core_type = #tpu.core_type<tc>, window_params = [{transform_indices = @transform_0, window_bounds = array<i64: 16, 32>}, {pipeline_mode = #tpu.pipeline_mode<synchronous>, transform_indices = @transform_1, window_bounds = array<i64: 32, 128>}, {pipeline_mode = #tpu.pipeline_mode<synchronous>, transform_indices = @transform_2, window_bounds = array<i64: 1, 128>}, {transform_indices = @transform_3, window_bounds = array<i64: 16, 128>}]} {
    %c0 = arith.constant 0 : index
    %c0_0 = arith.constant 0 : index
    %0 = vector.load %arg1[%c0, %c0_0] : memref<16x32xf32, #tpu.memory_space<vmem>>, vector<16x32xf32>
    %c0_1 = arith.constant 0 : index
    %c0_2 = arith.constant 0 : index
    %1 = vector.load %arg2[%c0_1, %c0_2] : memref<32x128xf32, #tpu.memory_space<vmem>>, vector<32x128xf32>
    %cst = arith.constant dense<0.000000e+00> : vector<16x128xf32>
    %2 = tpu.matmul %0, %1, %cst {dimension_numbers = #tpu.dot_dimension_numbers<[1], [0], [0], [1], [0, 0, 1, 1], [], []>} : vector<16x32xf32>, vector<32x128xf32>, vector<16x128xf32> -> vector<16x128xf32>
    %c0_3 = arith.constant 0 : index
    %c0_4 = arith.constant 0 : index
    %3 = vector.load %arg3[%c0_3, %c0_4] : memref<1x128xf32, #tpu.memory_space<vmem>>, vector<1x128xf32>
    %4 = vector.broadcast %3 : vector<1x128xf32> to vector<16x128xf32>
    %5 = arith.addf %2, %4 : vector<16x128xf32>
    %c0_5 = arith.constant 0 : index
    %c0_6 = arith.constant 0 : index
    %6 = vector.load %arg4[%c0_5, %c0_6] : memref<16x128xf32, #tpu.memory_space<vmem>>, vector<16x128xf32>
    tpu.vector_store %arg4[%c0_5, %c0_6], %5 {strides = array<i32>} : memref<16x128xf32, #tpu.memory_space<vmem>>, vector<16x128xf32>,
    return
  }
  func.func @transform_0(%arg0: i32) -> (i32, i32) {
    %c0_i32 = arith.constant 0 : i32
    %c0_i32_0 = arith.constant 0 : i32
    return %arg0, %c0_i32 : i32, i32
  }
  func.func @transform_1(%arg0: i32) -> (i32, i32) {
    %c0_i32 = arith.constant 0 : i32
    %c0_i32_0 = arith.constant 0 : i32
    %c0_i32_1 = arith.constant 0 : i32
    return %c0_i32, %c0_i32_0 : i32, i32
  }
  func.func @transform_2(%arg0: i32) -> (i32, i32) {
    %c0_i32 = arith.constant 0 : i32
    %c0_i32_0 = arith.constant 0 : i32
    %c0_i32_1 = arith.constant 0 : i32
    return %c0_i32, %c0_i32_0 : i32, i32
  }
  func.func @transform_3(%arg0: i32) -> (i32, i32) {
    %c0_i32 = arith.constant 0 : i32
    %c0_i32_0 = arith.constant 0 : i32
    return %arg0, %c0_i32 : i32, i32
  }
}

module attributes {stable_mosaic.version = 11 : i64} {
  func.func @_fused_projection_kernel(%arg0: i32, %arg1: memref<16x128xf32, #tpu.memory_space<vmem>>, %arg2: memref<128x128xf32, #tpu.memory_space<vmem>>, %arg3: memref<1x128xf32, #tpu.memory_space<vmem>>, %arg4: memref<16x128xf32, #tpu.memory_space<vmem>>) attributes {dimension_semantics = [#tpu.dimension_semantics<parallel>], iteration_bounds = array<i64: 1>, scalar_prefetch = 0 : i64, scratch_operands = 0 : i64, tpu.core_type = #tpu.core_type<tc>, window_params = [{transform_indices = @transform_0, window_bounds = array<i64: 16, 128>}, {pipeline_mode = #tpu.pipeline_mode<synchronous>, transform_indices = @transform_1, window_bounds = array<i64: 128, 128>}, {pipeline_mode = #tpu.pipeline_mode<synchronous>, transform_indices = @transform_2, window_bounds = array<i64: 1, 128>}, {transform_indices = @transform_3, window_bounds = array<i64: 16, 128>}]} {
    %c0 = arith.constant 0 : index
    %c0_0 = arith.constant 0 : index
    %0 = vector.load %arg1[%c0, %c0_0] : memref<16x128xf32, #tpu.memory_space<vmem>>, vector<16x128xf32>
    %c0_1 = arith.constant 0 : index
    %c0_2 = arith.constant 0 : index
    %1 = vector.load %arg2[%c0_1, %c0_2] : memref<128x128xf32, #tpu.memory_space<vmem>>, vector<128x128xf32>
    %cst = arith.constant dense<0.000000e+00> : vector<16x128xf32>
    %2 = tpu.matmul %0, %1, %cst {dimension_numbers = #tpu.dot_dimension_numbers<[1], [0], [0], [1], [0, 0, 1, 1], [], []>} : vector<16x128xf32>, vector<128x128xf32>, vector<16x128xf32> -> vector<16x128xf32>
    %c0_3 = arith.constant 0 : index
    %c0_4 = arith.constant 0 : index
    %3 = vector.load %arg3[%c0_3, %c0_4] : memref<1x128xf32, #tpu.memory_space<vmem>>, vector<1x128xf32>
    %4 = vector.broadcast %3 : vector<1x128xf32> to vector<16x128xf32>
    %5 = arith.addf %2, %4 : vector<16x128xf32>
    %c0_5 = arith.constant 0 : index
    %c0_6 = arith.constant 0 : index
    %6 = vector.load %arg4[%c0_5, %c0_6] : memref<16x128xf32, #tpu.memory_space<vmem>>, vector<16x128xf32>
    tpu.vector_store %arg4[%c0_5, %c0_6], %5 {strides = array<i32>} : memref<16x128xf32, #tpu.memory_space<vmem>>, vector<16x128xf32>,
    return
  }
  func.func @transform_0(%arg0: i32) -> (i32, i32) {
    %c0_i32 = arith.constant 0 : i32
    %c0_i32_0 = arith.constant 0 : i32
    return %arg0, %c0_i32 : i32, i32
  }
  func.func @transform_1(%arg0: i32) -> (i32, i32) {
    %c0_i32 = arith.constant 0 : i32
    %c0_i32_0 = arith.constant 0 : i32
    %c0_i32_1 = arith.constant 0 : i32
    return %c0_i32, %c0_i32_0 : i32, i32
  }
  func.func @transform_2(%arg0: i32) -> (i32, i32) {
    %c0_i32 = arith.constant 0 : i32
    %c0_i32_0 = arith.constant 0 : i32
    %c0_i32_1 = arith.constant 0 : i32
    return %c0_i32, %c0_i32_0 : i32, i32
  }
  func.func @transform_3(%arg0: i32) -> (i32, i32) {
    %c0_i32 = arith.constant 0 : i32
    %c0_i32_0 = arith.constant 0 : i32
    return %arg0, %c0_i32 : i32, i32
  }
}

module attributes {stable_mosaic.version = 11 : i64} {
  func.func @_gat_attention_kernel(%arg0: i32, %arg1: memref<16x8xf32, #tpu.memory_space<vmem>>, %arg2: memref<8x16xf32, #tpu.memory_space<vmem>>, %arg3: memref<16x8xf32, #tpu.memory_space<vmem>>, %arg4: memref<16x16xbf16, #tpu.memory_space<vmem>>, %arg5: memref<16x16xbf16, #tpu.memory_space<vmem>>, %arg6: memref<16x128xf32, #tpu.memory_space<vmem>>) attributes {dimension_semantics = [#tpu.dimension_semantics<parallel>], iteration_bounds = array<i64: 1>, scalar_prefetch = 0 : i64, scratch_operands = 0 : i64, tpu.core_type = #tpu.core_type<tc>, window_params = [{transform_indices = @transform_0, window_bounds = array<i64: 16, 8>}, {pipeline_mode = #tpu.pipeline_mode<synchronous>, transform_indices = @transform_1, window_bounds = array<i64: 8, 16>}, {pipeline_mode = #tpu.pipeline_mode<synchronous>, transform_indices = @transform_2, window_bounds = array<i64: 16, 8>}, {transform_indices = @transform_3, window_bounds = array<i64: 16, 16>}, {transform_indices = @transform_4, window_bounds = array<i64: 16, 16>}, {transform_indices = @transform_5, window_bounds = array<i64: 16, 128>}]} {
    %c0 = arith.constant 0 : index
    %c0_0 = arith.constant 0 : index
    %0 = vector.load %arg1[%c0, %c0_0] : memref<16x8xf32, #tpu.memory_space<vmem>>, vector<16x8xf32>
    %c0_1 = arith.constant 0 : index
    %c0_2 = arith.constant 0 : index
    %1 = vector.load %arg2[%c0_1, %c0_2] : memref<8x16xf32, #tpu.memory_space<vmem>>, vector<8x16xf32>
    %c0_3 = arith.constant 0 : index
    %c0_4 = arith.constant 0 : index
    %2 = vector.load %arg3[%c0_3, %c0_4] : memref<16x8xf32, #tpu.memory_space<vmem>>, vector<16x8xf32>
    %3 = arith.truncf %2 : vector<16x8xf32> to vector<16x8xbf16>
    %c0_5 = arith.constant 0 : index
    %c0_6 = arith.constant 0 : index
    %4 = vector.load %arg4[%c0_5, %c0_6] : memref<16x16xbf16, #tpu.memory_space<vmem>>, vector<16x16xbf16>
    %5 = arith.extf %4 : vector<16x16xbf16> to vector<16x16xf32>
    %c0_7 = arith.constant 0 : index
    %c0_8 = arith.constant 0 : index
    %6 = vector.load %arg5[%c0_7, %c0_8] : memref<16x16xbf16, #tpu.memory_space<vmem>>, vector<16x16xbf16>
    %7 = arith.extf %6 : vector<16x16xbf16> to vector<16x16xf32>
    %cst = arith.constant 0.000000e+00 : f32
    %8 = vector.broadcast %cst : f32 to vector<16x128xf32>
    %c0_9 = arith.constant 0 : index
    %c0_10 = arith.constant 0 : index
    %9 = vector.load %arg6[%c0_9, %c0_10] : memref<16x128xf32, #tpu.memory_space<vmem>>, vector<16x128xf32>
    tpu.vector_store %arg6[%c0_9, %c0_10], %8 {strides = array<i32>} : memref<16x128xf32, #tpu.memory_space<vmem>>, vector<16x128xf32>,
    %10 = vector.extract_strided_slice %0 {offsets = [0, 0], sizes = [16, 1], strides = [1, 1]} : vector<16x8xf32> to vector<16x1xf32>
    %11 = vector.extract_strided_slice %1 {offsets = [0, 0], sizes = [1, 16], strides = [1, 1]} : vector<8x16xf32> to vector<1x16xf32>
    %12 = vector.broadcast %10 : vector<16x1xf32> to vector<16x16xf32>
    %13 = vector.broadcast %11 : vector<1x16xf32> to vector<16x16xf32>
    %14 = arith.addf %12, %13 : vector<16x16xf32>
    %cst_11 = arith.constant 0.000000e+00 : f32
    %15 = vector.broadcast %cst_11 : f32 to vector<16x16xf32>
    %16 = arith.cmpf ogt, %14, %15 : vector<16x16xf32>
    %cst_12 = arith.constant 2.000000e-01 : f32
    %17 = vector.broadcast %cst_12 : f32 to vector<16x16xf32>
    %18 = arith.mulf %17, %14 : vector<16x16xf32>
    %19 = arith.select %16, %14, %18 : vector<16x16xi1>, vector<16x16xf32>
    %20 = arith.mulf %7, %19 : vector<16x16xf32>
    %cst_13 = arith.constant dense<0.000000e+00> : vector<16xf32>
    %21 = vector.multi_reduction <add>, %20, %cst_13 [1] : vector<16x16xf32> to vector<16xf32>
    %22 = vector.shape_cast %21 : vector<16xf32> to vector<16x1xf32>
    %cst_14 = arith.constant 0.000000e+00 : f32
    %23 = vector.broadcast %cst_14 : f32 to vector<16x1xf32>
    %24 = arith.cmpf oeq, %22, %23 : vector<16x1xf32>
    %cst_15 = arith.constant 1.000000e+00 : f32
    %25 = vector.broadcast %cst_15 : f32 to vector<16x1xf32>
    %26 = arith.select %24, %25, %22 : vector<16x1xi1>, vector<16x1xf32>
    %27 = arith.mulf %5, %19 : vector<16x16xf32>
    %28 = arith.truncf %27 : vector<16x16xf32> to vector<16x16xbf16>
    %cst_16 = arith.constant dense<0.000000e+00> : vector<16x8xf32>
    %29 = tpu.matmul %28, %3, %cst_16 {dimension_numbers = #tpu.dot_dimension_numbers<[1], [0], [0], [1], [0, 0, 1, 1], [], []>} : vector<16x16xbf16>, vector<16x8xbf16>, vector<16x8xf32> -> vector<16x8xf32>
    %30 = tpu.reciprocal %26 {approx = true} : vector<16x1xf32> -> vector<16x1xf32>
    %31 = vector.broadcast %30 : vector<16x1xf32> to vector<16x8xf32>
    %32 = arith.mulf %29, %31 : vector<16x8xf32>
    %cst_17 = arith.constant 0.000000e+00 : f32
    %33 = vector.broadcast %cst_17 : f32 to vector<16x8xf32>
    %34 = arith.cmpf ogt, %32, %33 : vector<16x8xf32>
    %35 = math.exp %32 : vector<16x8xf32>
    %cst_18 = arith.constant 1.000000e+00 : f32
    %36 = vector.broadcast %cst_18 : f32 to vector<16x8xf32>
    %37 = arith.subf %35, %36 : vector<16x8xf32>
    %38 = arith.select %34, %32, %37 : vector<16x8xi1>, vector<16x8xf32>
    %c0_19 = arith.constant 0 : index
    %c0_20 = arith.constant 0 : index
    %39 = vector.load %arg6[%c0_19, %c0_20] : memref<16x128xf32, #tpu.memory_space<vmem>>, vector<16x8xf32>
    tpu.vector_store %arg6[%c0_19, %c0_20], %38 {strides = array<i32>} : memref<16x128xf32, #tpu.memory_space<vmem>>, vector<16x8xf32>,
    %40 = vector.extract_strided_slice %0 {offsets = [0, 1], sizes = [16, 1], strides = [1, 1]} : vector<16x8xf32> to vector<16x1xf32>
    %41 = vector.extract_strided_slice %1 {offsets = [1, 0], sizes = [1, 16], strides = [1, 1]} : vector<8x16xf32> to vector<1x16xf32>
    %42 = vector.broadcast %40 : vector<16x1xf32> to vector<16x16xf32>
    %43 = vector.broadcast %41 : vector<1x16xf32> to vector<16x16xf32>
    %44 = arith.addf %42, %43 : vector<16x16xf32>
    %cst_21 = arith.constant 0.000000e+00 : f32
    %45 = vector.broadcast %cst_21 : f32 to vector<16x16xf32>
    %46 = arith.cmpf ogt, %44, %45 : vector<16x16xf32>
    %cst_22 = arith.constant 2.000000e-01 : f32
    %47 = vector.broadcast %cst_22 : f32 to vector<16x16xf32>
    %48 = arith.mulf %47, %44 : vector<16x16xf32>
    %49 = arith.select %46, %44, %48 : vector<16x16xi1>, vector<16x16xf32>
    %50 = arith.mulf %7, %49 : vector<16x16xf32>
    %cst_23 = arith.constant dense<0.000000e+00> : vector<16xf32>
    %51 = vector.multi_reduction <add>, %50, %cst_23 [1] : vector<16x16xf32> to vector<16xf32>
    %52 = vector.shape_cast %51 : vector<16xf32> to vector<16x1xf32>
    %cst_24 = arith.constant 0.000000e+00 : f32
    %53 = vector.broadcast %cst_24 : f32 to vector<16x1xf32>
    %54 = arith.cmpf oeq, %52, %53 : vector<16x1xf32>
    %cst_25 = arith.constant 1.000000e+00 : f32
    %55 = vector.broadcast %cst_25 : f32 to vector<16x1xf32>
    %56 = arith.select %54, %55, %52 : vector<16x1xi1>, vector<16x1xf32>
    %57 = arith.mulf %5, %49 : vector<16x16xf32>
    %58 = arith.truncf %57 : vector<16x16xf32> to vector<16x16xbf16>
    %cst_26 = arith.constant dense<0.000000e+00> : vector<16x8xf32>
    %59 = tpu.matmul %58, %3, %cst_26 {dimension_numbers = #tpu.dot_dimension_numbers<[1], [0], [0], [1], [0, 0, 1, 1], [], []>} : vector<16x16xbf16>, vector<16x8xbf16>, vector<16x8xf32> -> vector<16x8xf32>
    %60 = tpu.reciprocal %56 {approx = true} : vector<16x1xf32> -> vector<16x1xf32>
    %61 = vector.broadcast %60 : vector<16x1xf32> to vector<16x8xf32>
    %62 = arith.mulf %59, %61 : vector<16x8xf32>
    %cst_27 = arith.constant 0.000000e+00 : f32
    %63 = vector.broadcast %cst_27 : f32 to vector<16x8xf32>
    %64 = arith.cmpf ogt, %62, %63 : vector<16x8xf32>
    %65 = math.exp %62 : vector<16x8xf32>
    %cst_28 = arith.constant 1.000000e+00 : f32
    %66 = vector.broadcast %cst_28 : f32 to vector<16x8xf32>
    %67 = arith.subf %65, %66 : vector<16x8xf32>
    %68 = arith.select %64, %62, %67 : vector<16x8xi1>, vector<16x8xf32>
    %c0_29 = arith.constant 0 : index
    %c8 = arith.constant 8 : index
    %69 = vector.load %arg6[%c0_29, %c8] : memref<16x128xf32, #tpu.memory_space<vmem>>, vector<16x8xf32>
    tpu.vector_store %arg6[%c0_29, %c8], %68 {strides = array<i32>} : memref<16x128xf32, #tpu.memory_space<vmem>>, vector<16x8xf32>,
    %70 = vector.extract_strided_slice %0 {offsets = [0, 2], sizes = [16, 1], strides = [1, 1]} : vector<16x8xf32> to vector<16x1xf32>
    %71 = vector.extract_strided_slice %1 {offsets = [2, 0], sizes = [1, 16], strides = [1, 1]} : vector<8x16xf32> to vector<1x16xf32>
    %72 = vector.broadcast %70 : vector<16x1xf32> to vector<16x16xf32>
    %73 = vector.broadcast %71 : vector<1x16xf32> to vector<16x16xf32>
    %74 = arith.addf %72, %73 : vector<16x16xf32>
    %cst_30 = arith.constant 0.000000e+00 : f32
    %75 = vector.broadcast %cst_30 : f32 to vector<16x16xf32>
    %76 = arith.cmpf ogt, %74, %75 : vector<16x16xf32>
    %cst_31 = arith.constant 2.000000e-01 : f32
    %77 = vector.broadcast %cst_31 : f32 to vector<16x16xf32>
    %78 = arith.mulf %77, %74 : vector<16x16xf32>
    %79 = arith.select %76, %74, %78 : vector<16x16xi1>, vector<16x16xf32>
    %80 = arith.mulf %7, %79 : vector<16x16xf32>
    %cst_32 = arith.constant dense<0.000000e+00> : vector<16xf32>
    %81 = vector.multi_reduction <add>, %80, %cst_32 [1] : vector<16x16xf32> to vector<16xf32>
    %82 = vector.shape_cast %81 : vector<16xf32> to vector<16x1xf32>
    %cst_33 = arith.constant 0.000000e+00 : f32
    %83 = vector.broadcast %cst_33 : f32 to vector<16x1xf32>
    %84 = arith.cmpf oeq, %82, %83 : vector<16x1xf32>
    %cst_34 = arith.constant 1.000000e+00 : f32
    %85 = vector.broadcast %cst_34 : f32 to vector<16x1xf32>
    %86 = arith.select %84, %85, %82 : vector<16x1xi1>, vector<16x1xf32>
    %87 = arith.mulf %5, %79 : vector<16x16xf32>
    %88 = arith.truncf %87 : vector<16x16xf32> to vector<16x16xbf16>
    %cst_35 = arith.constant dense<0.000000e+00> : vector<16x8xf32>
    %89 = tpu.matmul %88, %3, %cst_35 {dimension_numbers = #tpu.dot_dimension_numbers<[1], [0], [0], [1], [0, 0, 1, 1], [], []>} : vector<16x16xbf16>, vector<16x8xbf16>, vector<16x8xf32> -> vector<16x8xf32>
    %90 = tpu.reciprocal %86 {approx = true} : vector<16x1xf32> -> vector<16x1xf32>
    %91 = vector.broadcast %90 : vector<16x1xf32> to vector<16x8xf32>
    %92 = arith.mulf %89, %91 : vector<16x8xf32>
    %cst_36 = arith.constant 0.000000e+00 : f32
    %93 = vector.broadcast %cst_36 : f32 to vector<16x8xf32>
    %94 = arith.cmpf ogt, %92, %93 : vector<16x8xf32>
    %95 = math.exp %92 : vector<16x8xf32>
    %cst_37 = arith.constant 1.000000e+00 : f32
    %96 = vector.broadcast %cst_37 : f32 to vector<16x8xf32>
    %97 = arith.subf %95, %96 : vector<16x8xf32>
    %98 = arith.select %94, %92, %97 : vector<16x8xi1>, vector<16x8xf32>
    %c0_38 = arith.constant 0 : index
    %c16 = arith.constant 16 : index
    %99 = vector.load %arg6[%c0_38, %c16] : memref<16x128xf32, #tpu.memory_space<vmem>>, vector<16x8xf32>
    tpu.vector_store %arg6[%c0_38, %c16], %98 {strides = array<i32>} : memref<16x128xf32, #tpu.memory_space<vmem>>, vector<16x8xf32>,
    %100 = vector.extract_strided_slice %0 {offsets = [0, 3], sizes = [16, 1], strides = [1, 1]} : vector<16x8xf32> to vector<16x1xf32>
    %101 = vector.extract_strided_slice %1 {offsets = [3, 0], sizes = [1, 16], strides = [1, 1]} : vector<8x16xf32> to vector<1x16xf32>
    %102 = vector.broadcast %100 : vector<16x1xf32> to vector<16x16xf32>
    %103 = vector.broadcast %101 : vector<1x16xf32> to vector<16x16xf32>
    %104 = arith.addf %102, %103 : vector<16x16xf32>
    %cst_39 = arith.constant 0.000000e+00 : f32
    %105 = vector.broadcast %cst_39 : f32 to vector<16x16xf32>
    %106 = arith.cmpf ogt, %104, %105 : vector<16x16xf32>
    %cst_40 = arith.constant 2.000000e-01 : f32
    %107 = vector.broadcast %cst_40 : f32 to vector<16x16xf32>
    %108 = arith.mulf %107, %104 : vector<16x16xf32>
    %109 = arith.select %106, %104, %108 : vector<16x16xi1>, vector<16x16xf32>
    %110 = arith.mulf %7, %109 : vector<16x16xf32>
    %cst_41 = arith.constant dense<0.000000e+00> : vector<16xf32>
    %111 = vector.multi_reduction <add>, %110, %cst_41 [1] : vector<16x16xf32> to vector<16xf32>
    %112 = vector.shape_cast %111 : vector<16xf32> to vector<16x1xf32>
    %cst_42 = arith.constant 0.000000e+00 : f32
    %113 = vector.broadcast %cst_42 : f32 to vector<16x1xf32>
    %114 = arith.cmpf oeq, %112, %113 : vector<16x1xf32>
    %cst_43 = arith.constant 1.000000e+00 : f32
    %115 = vector.broadcast %cst_43 : f32 to vector<16x1xf32>
    %116 = arith.select %114, %115, %112 : vector<16x1xi1>, vector<16x1xf32>
    %117 = arith.mulf %5, %109 : vector<16x16xf32>
    %118 = arith.truncf %117 : vector<16x16xf32> to vector<16x16xbf16>
    %cst_44 = arith.constant dense<0.000000e+00> : vector<16x8xf32>
    %119 = tpu.matmul %118, %3, %cst_44 {dimension_numbers = #tpu.dot_dimension_numbers<[1], [0], [0], [1], [0, 0, 1, 1], [], []>} : vector<16x16xbf16>, vector<16x8xbf16>, vector<16x8xf32> -> vector<16x8xf32>
    %120 = tpu.reciprocal %116 {approx = true} : vector<16x1xf32> -> vector<16x1xf32>
    %121 = vector.broadcast %120 : vector<16x1xf32> to vector<16x8xf32>
    %122 = arith.mulf %119, %121 : vector<16x8xf32>
    %cst_45 = arith.constant 0.000000e+00 : f32
    %123 = vector.broadcast %cst_45 : f32 to vector<16x8xf32>
    %124 = arith.cmpf ogt, %122, %123 : vector<16x8xf32>
    %125 = math.exp %122 : vector<16x8xf32>
    %cst_46 = arith.constant 1.000000e+00 : f32
    %126 = vector.broadcast %cst_46 : f32 to vector<16x8xf32>
    %127 = arith.subf %125, %126 : vector<16x8xf32>
    %128 = arith.select %124, %122, %127 : vector<16x8xi1>, vector<16x8xf32>
    %c0_47 = arith.constant 0 : index
    %c24 = arith.constant 24 : index
    %129 = vector.load %arg6[%c0_47, %c24] : memref<16x128xf32, #tpu.memory_space<vmem>>, vector<16x8xf32>
    tpu.vector_store %arg6[%c0_47, %c24], %128 {strides = array<i32>} : memref<16x128xf32, #tpu.memory_space<vmem>>, vector<16x8xf32>,
    %130 = vector.extract_strided_slice %0 {offsets = [0, 4], sizes = [16, 1], strides = [1, 1]} : vector<16x8xf32> to vector<16x1xf32>
    %131 = vector.extract_strided_slice %1 {offsets = [4, 0], sizes = [1, 16], strides = [1, 1]} : vector<8x16xf32> to vector<1x16xf32>
    %132 = vector.broadcast %130 : vector<16x1xf32> to vector<16x16xf32>
    %133 = vector.broadcast %131 : vector<1x16xf32> to vector<16x16xf32>
    %134 = arith.addf %132, %133 : vector<16x16xf32>
    %cst_48 = arith.constant 0.000000e+00 : f32
    %135 = vector.broadcast %cst_48 : f32 to vector<16x16xf32>
    %136 = arith.cmpf ogt, %134, %135 : vector<16x16xf32>
    %cst_49 = arith.constant 2.000000e-01 : f32
    %137 = vector.broadcast %cst_49 : f32 to vector<16x16xf32>
    %138 = arith.mulf %137, %134 : vector<16x16xf32>
    %139 = arith.select %136, %134, %138 : vector<16x16xi1>, vector<16x16xf32>
    %140 = arith.mulf %7, %139 : vector<16x16xf32>
    %cst_50 = arith.constant dense<0.000000e+00> : vector<16xf32>
    %141 = vector.multi_reduction <add>, %140, %cst_50 [1] : vector<16x16xf32> to vector<16xf32>
    %142 = vector.shape_cast %141 : vector<16xf32> to vector<16x1xf32>
    %cst_51 = arith.constant 0.000000e+00 : f32
    %143 = vector.broadcast %cst_51 : f32 to vector<16x1xf32>
    %144 = arith.cmpf oeq, %142, %143 : vector<16x1xf32>
    %cst_52 = arith.constant 1.000000e+00 : f32
    %145 = vector.broadcast %cst_52 : f32 to vector<16x1xf32>
    %146 = arith.select %144, %145, %142 : vector<16x1xi1>, vector<16x1xf32>
    %147 = arith.mulf %5, %139 : vector<16x16xf32>
    %148 = arith.truncf %147 : vector<16x16xf32> to vector<16x16xbf16>
    %cst_53 = arith.constant dense<0.000000e+00> : vector<16x8xf32>
    %149 = tpu.matmul %148, %3, %cst_53 {dimension_numbers = #tpu.dot_dimension_numbers<[1], [0], [0], [1], [0, 0, 1, 1], [], []>} : vector<16x16xbf16>, vector<16x8xbf16>, vector<16x8xf32> -> vector<16x8xf32>
    %150 = tpu.reciprocal %146 {approx = true} : vector<16x1xf32> -> vector<16x1xf32>
    %151 = vector.broadcast %150 : vector<16x1xf32> to vector<16x8xf32>
    %152 = arith.mulf %149, %151 : vector<16x8xf32>
    %cst_54 = arith.constant 0.000000e+00 : f32
    %153 = vector.broadcast %cst_54 : f32 to vector<16x8xf32>
    %154 = arith.cmpf ogt, %152, %153 : vector<16x8xf32>
    %155 = math.exp %152 : vector<16x8xf32>
    %cst_55 = arith.constant 1.000000e+00 : f32
    %156 = vector.broadcast %cst_55 : f32 to vector<16x8xf32>
    %157 = arith.subf %155, %156 : vector<16x8xf32>
    %158 = arith.select %154, %152, %157 : vector<16x8xi1>, vector<16x8xf32>
    %c0_56 = arith.constant 0 : index
    %c32 = arith.constant 32 : index
    %159 = vector.load %arg6[%c0_56, %c32] : memref<16x128xf32, #tpu.memory_space<vmem>>, vector<16x8xf32>
    tpu.vector_store %arg6[%c0_56, %c32], %158 {strides = array<i32>} : memref<16x128xf32, #tpu.memory_space<vmem>>, vector<16x8xf32>,
    %160 = vector.extract_strided_slice %0 {offsets = [0, 5], sizes = [16, 1], strides = [1, 1]} : vector<16x8xf32> to vector<16x1xf32>
    %161 = vector.extract_strided_slice %1 {offsets = [5, 0], sizes = [1, 16], strides = [1, 1]} : vector<8x16xf32> to vector<1x16xf32>
    %162 = vector.broadcast %160 : vector<16x1xf32> to vector<16x16xf32>
    %163 = vector.broadcast %161 : vector<1x16xf32> to vector<16x16xf32>
    %164 = arith.addf %162, %163 : vector<16x16xf32>
    %cst_57 = arith.constant 0.000000e+00 : f32
    %165 = vector.broadcast %cst_57 : f32 to vector<16x16xf32>
    %166 = arith.cmpf ogt, %164, %165 : vector<16x16xf32>
    %cst_58 = arith.constant 2.000000e-01 : f32
    %167 = vector.broadcast %cst_58 : f32 to vector<16x16xf32>
    %168 = arith.mulf %167, %164 : vector<16x16xf32>
    %169 = arith.select %166, %164, %168 : vector<16x16xi1>, vector<16x16xf32>
    %170 = arith.mulf %7, %169 : vector<16x16xf32>
    %cst_59 = arith.constant dense<0.000000e+00> : vector<16xf32>
    %171 = vector.multi_reduction <add>, %170, %cst_59 [1] : vector<16x16xf32> to vector<16xf32>
    %172 = vector.shape_cast %171 : vector<16xf32> to vector<16x1xf32>
    %cst_60 = arith.constant 0.000000e+00 : f32
    %173 = vector.broadcast %cst_60 : f32 to vector<16x1xf32>
    %174 = arith.cmpf oeq, %172, %173 : vector<16x1xf32>
    %cst_61 = arith.constant 1.000000e+00 : f32
    %175 = vector.broadcast %cst_61 : f32 to vector<16x1xf32>
    %176 = arith.select %174, %175, %172 : vector<16x1xi1>, vector<16x1xf32>
    %177 = arith.mulf %5, %169 : vector<16x16xf32>
    %178 = arith.truncf %177 : vector<16x16xf32> to vector<16x16xbf16>
    %cst_62 = arith.constant dense<0.000000e+00> : vector<16x8xf32>
    %179 = tpu.matmul %178, %3, %cst_62 {dimension_numbers = #tpu.dot_dimension_numbers<[1], [0], [0], [1], [0, 0, 1, 1], [], []>} : vector<16x16xbf16>, vector<16x8xbf16>, vector<16x8xf32> -> vector<16x8xf32>
    %180 = tpu.reciprocal %176 {approx = true} : vector<16x1xf32> -> vector<16x1xf32>
    %181 = vector.broadcast %180 : vector<16x1xf32> to vector<16x8xf32>
    %182 = arith.mulf %179, %181 : vector<16x8xf32>
    %cst_63 = arith.constant 0.000000e+00 : f32
    %183 = vector.broadcast %cst_63 : f32 to vector<16x8xf32>
    %184 = arith.cmpf ogt, %182, %183 : vector<16x8xf32>
    %185 = math.exp %182 : vector<16x8xf32>
    %cst_64 = arith.constant 1.000000e+00 : f32
    %186 = vector.broadcast %cst_64 : f32 to vector<16x8xf32>
    %187 = arith.subf %185, %186 : vector<16x8xf32>
    %188 = arith.select %184, %182, %187 : vector<16x8xi1>, vector<16x8xf32>
    %c0_65 = arith.constant 0 : index
    %c40 = arith.constant 40 : index
    %189 = vector.load %arg6[%c0_65, %c40] : memref<16x128xf32, #tpu.memory_space<vmem>>, vector<16x8xf32>
    tpu.vector_store %arg6[%c0_65, %c40], %188 {strides = array<i32>} : memref<16x128xf32, #tpu.memory_space<vmem>>, vector<16x8xf32>,
    %190 = vector.extract_strided_slice %0 {offsets = [0, 6], sizes = [16, 1], strides = [1, 1]} : vector<16x8xf32> to vector<16x1xf32>
    %191 = vector.extract_strided_slice %1 {offsets = [6, 0], sizes = [1, 16], strides = [1, 1]} : vector<8x16xf32> to vector<1x16xf32>
    %192 = vector.broadcast %190 : vector<16x1xf32> to vector<16x16xf32>
    %193 = vector.broadcast %191 : vector<1x16xf32> to vector<16x16xf32>
    %194 = arith.addf %192, %193 : vector<16x16xf32>
    %cst_66 = arith.constant 0.000000e+00 : f32
    %195 = vector.broadcast %cst_66 : f32 to vector<16x16xf32>
    %196 = arith.cmpf ogt, %194, %195 : vector<16x16xf32>
    %cst_67 = arith.constant 2.000000e-01 : f32
    %197 = vector.broadcast %cst_67 : f32 to vector<16x16xf32>
    %198 = arith.mulf %197, %194 : vector<16x16xf32>
    %199 = arith.select %196, %194, %198 : vector<16x16xi1>, vector<16x16xf32>
    %200 = arith.mulf %7, %199 : vector<16x16xf32>
    %cst_68 = arith.constant dense<0.000000e+00> : vector<16xf32>
    %201 = vector.multi_reduction <add>, %200, %cst_68 [1] : vector<16x16xf32> to vector<16xf32>
    %202 = vector.shape_cast %201 : vector<16xf32> to vector<16x1xf32>
    %cst_69 = arith.constant 0.000000e+00 : f32
    %203 = vector.broadcast %cst_69 : f32 to vector<16x1xf32>
    %204 = arith.cmpf oeq, %202, %203 : vector<16x1xf32>
    %cst_70 = arith.constant 1.000000e+00 : f32
    %205 = vector.broadcast %cst_70 : f32 to vector<16x1xf32>
    %206 = arith.select %204, %205, %202 : vector<16x1xi1>, vector<16x1xf32>
    %207 = arith.mulf %5, %199 : vector<16x16xf32>
    %208 = arith.truncf %207 : vector<16x16xf32> to vector<16x16xbf16>
    %cst_71 = arith.constant dense<0.000000e+00> : vector<16x8xf32>
    %209 = tpu.matmul %208, %3, %cst_71 {dimension_numbers = #tpu.dot_dimension_numbers<[1], [0], [0], [1], [0, 0, 1, 1], [], []>} : vector<16x16xbf16>, vector<16x8xbf16>, vector<16x8xf32> -> vector<16x8xf32>
    %210 = tpu.reciprocal %206 {approx = true} : vector<16x1xf32> -> vector<16x1xf32>
    %211 = vector.broadcast %210 : vector<16x1xf32> to vector<16x8xf32>
    %212 = arith.mulf %209, %211 : vector<16x8xf32>
    %cst_72 = arith.constant 0.000000e+00 : f32
    %213 = vector.broadcast %cst_72 : f32 to vector<16x8xf32>
    %214 = arith.cmpf ogt, %212, %213 : vector<16x8xf32>
    %215 = math.exp %212 : vector<16x8xf32>
    %cst_73 = arith.constant 1.000000e+00 : f32
    %216 = vector.broadcast %cst_73 : f32 to vector<16x8xf32>
    %217 = arith.subf %215, %216 : vector<16x8xf32>
    %218 = arith.select %214, %212, %217 : vector<16x8xi1>, vector<16x8xf32>
    %c0_74 = arith.constant 0 : index
    %c48 = arith.constant 48 : index
    %219 = vector.load %arg6[%c0_74, %c48] : memref<16x128xf32, #tpu.memory_space<vmem>>, vector<16x8xf32>
    tpu.vector_store %arg6[%c0_74, %c48], %218 {strides = array<i32>} : memref<16x128xf32, #tpu.memory_space<vmem>>, vector<16x8xf32>,
    %220 = vector.extract_strided_slice %0 {offsets = [0, 7], sizes = [16, 1], strides = [1, 1]} : vector<16x8xf32> to vector<16x1xf32>
    %221 = vector.extract_strided_slice %1 {offsets = [7, 0], sizes = [1, 16], strides = [1, 1]} : vector<8x16xf32> to vector<1x16xf32>
    %222 = vector.broadcast %220 : vector<16x1xf32> to vector<16x16xf32>
    %223 = vector.broadcast %221 : vector<1x16xf32> to vector<16x16xf32>
    %224 = arith.addf %222, %223 : vector<16x16xf32>
    %cst_75 = arith.constant 0.000000e+00 : f32
    %225 = vector.broadcast %cst_75 : f32 to vector<16x16xf32>
    %226 = arith.cmpf ogt, %224, %225 : vector<16x16xf32>
    %cst_76 = arith.constant 2.000000e-01 : f32
    %227 = vector.broadcast %cst_76 : f32 to vector<16x16xf32>
    %228 = arith.mulf %227, %224 : vector<16x16xf32>
    %229 = arith.select %226, %224, %228 : vector<16x16xi1>, vector<16x16xf32>
    %230 = arith.mulf %7, %229 : vector<16x16xf32>
    %cst_77 = arith.constant dense<0.000000e+00> : vector<16xf32>
    %231 = vector.multi_reduction <add>, %230, %cst_77 [1] : vector<16x16xf32> to vector<16xf32>
    %232 = vector.shape_cast %231 : vector<16xf32> to vector<16x1xf32>
    %cst_78 = arith.constant 0.000000e+00 : f32
    %233 = vector.broadcast %cst_78 : f32 to vector<16x1xf32>
    %234 = arith.cmpf oeq, %232, %233 : vector<16x1xf32>
    %cst_79 = arith.constant 1.000000e+00 : f32
    %235 = vector.broadcast %cst_79 : f32 to vector<16x1xf32>
    %236 = arith.select %234, %235, %232 : vector<16x1xi1>, vector<16x1xf32>
    %237 = arith.mulf %5, %229 : vector<16x16xf32>
    %238 = arith.truncf %237 : vector<16x16xf32> to vector<16x16xbf16>
    %cst_80 = arith.constant dense<0.000000e+00> : vector<16x8xf32>
    %239 = tpu.matmul %238, %3, %cst_80 {dimension_numbers = #tpu.dot_dimension_numbers<[1], [0], [0], [1], [0, 0, 1, 1], [], []>} : vector<16x16xbf16>, vector<16x8xbf16>, vector<16x8xf32> -> vector<16x8xf32>
    %240 = tpu.reciprocal %236 {approx = true} : vector<16x1xf32> -> vector<16x1xf32>
    %241 = vector.broadcast %240 : vector<16x1xf32> to vector<16x8xf32>
    %242 = arith.mulf %239, %241 : vector<16x8xf32>
    %cst_81 = arith.constant 0.000000e+00 : f32
    %243 = vector.broadcast %cst_81 : f32 to vector<16x8xf32>
    %244 = arith.cmpf ogt, %242, %243 : vector<16x8xf32>
    %245 = math.exp %242 : vector<16x8xf32>
    %cst_82 = arith.constant 1.000000e+00 : f32
    %246 = vector.broadcast %cst_82 : f32 to vector<16x8xf32>
    %247 = arith.subf %245, %246 : vector<16x8xf32>
    %248 = arith.select %244, %242, %247 : vector<16x8xi1>, vector<16x8xf32>
    %c0_83 = arith.constant 0 : index
    %c56 = arith.constant 56 : index
    %249 = vector.load %arg6[%c0_83, %c56] : memref<16x128xf32, #tpu.memory_space<vmem>>, vector<16x8xf32>
    tpu.vector_store %arg6[%c0_83, %c56], %248 {strides = array<i32>} : memref<16x128xf32, #tpu.memory_space<vmem>>, vector<16x8xf32>,
    return
  }
  func.func @transform_0(%arg0: i32) -> (i32, i32) {
    %c0_i32 = arith.constant 0 : i32
    %c0_i32_0 = arith.constant 0 : i32
    return %arg0, %c0_i32 : i32, i32
  }
  func.func @transform_1(%arg0: i32) -> (i32, i32) {
    %c0_i32 = arith.constant 0 : i32
    %c0_i32_0 = arith.constant 0 : i32
    %c0_i32_1 = arith.constant 0 : i32
    return %c0_i32, %c0_i32_0 : i32, i32
  }
  func.func @transform_2(%arg0: i32) -> (i32, i32) {
    %c0_i32 = arith.constant 0 : i32
    %c0_i32_0 = arith.constant 0 : i32
    %c0_i32_1 = arith.constant 0 : i32
    return %c0_i32, %c0_i32_0 : i32, i32
  }
  func.func @transform_3(%arg0: i32) -> (i32, i32) {
    %c0_i32 = arith.constant 0 : i32
    %c0_i32_0 = arith.constant 0 : i32
    return %arg0, %c0_i32 : i32, i32
  }
  func.func @transform_4(%arg0: i32) -> (i32, i32) {
    %c0_i32 = arith.constant 0 : i32
    %c0_i32_0 = arith.constant 0 : i32
    return %arg0, %c0_i32 : i32, i32
  }
  func.func @transform_5(%arg0: i32) -> (i32, i32) {
    %c0_i32 = arith.constant 0 : i32
    %c0_i32_0 = arith.constant 0 : i32
    return %arg0, %c0_i32 : i32, i32
  }
}

module attributes {stable_mosaic.version = 11 : i64} {
  func.func @_gat_attention_kernel(%arg0: i32, %arg1: memref<16x1xf32, #tpu.memory_space<vmem>>, %arg2: memref<1x16xf32, #tpu.memory_space<vmem>>, %arg3: memref<16x4xf32, #tpu.memory_space<vmem>>, %arg4: memref<16x16xbf16, #tpu.memory_space<vmem>>, %arg5: memref<16x16xbf16, #tpu.memory_space<vmem>>, %arg6: memref<16x128xf32, #tpu.memory_space<vmem>>) attributes {dimension_semantics = [#tpu.dimension_semantics<parallel>], iteration_bounds = array<i64: 1>, scalar_prefetch = 0 : i64, scratch_operands = 0 : i64, tpu.core_type = #tpu.core_type<tc>, window_params = [{transform_indices = @transform_0, window_bounds = array<i64: 16, 1>}, {pipeline_mode = #tpu.pipeline_mode<synchronous>, transform_indices = @transform_1, window_bounds = array<i64: 1, 16>}, {pipeline_mode = #tpu.pipeline_mode<synchronous>, transform_indices = @transform_2, window_bounds = array<i64: 16, 4>}, {transform_indices = @transform_3, window_bounds = array<i64: 16, 16>}, {transform_indices = @transform_4, window_bounds = array<i64: 16, 16>}, {transform_indices = @transform_5, window_bounds = array<i64: 16, 128>}]} {
    %c0 = arith.constant 0 : index
    %c0_0 = arith.constant 0 : index
    %0 = vector.load %arg1[%c0, %c0_0] : memref<16x1xf32, #tpu.memory_space<vmem>>, vector<16x1xf32>
    %c0_1 = arith.constant 0 : index
    %c0_2 = arith.constant 0 : index
    %1 = vector.load %arg2[%c0_1, %c0_2] : memref<1x16xf32, #tpu.memory_space<vmem>>, vector<1x16xf32>
    %c0_3 = arith.constant 0 : index
    %c0_4 = arith.constant 0 : index
    %2 = vector.load %arg3[%c0_3, %c0_4] : memref<16x4xf32, #tpu.memory_space<vmem>>, vector<16x4xf32>
    %3 = arith.truncf %2 : vector<16x4xf32> to vector<16x4xbf16>
    %c0_5 = arith.constant 0 : index
    %c0_6 = arith.constant 0 : index
    %4 = vector.load %arg4[%c0_5, %c0_6] : memref<16x16xbf16, #tpu.memory_space<vmem>>, vector<16x16xbf16>
    %5 = arith.extf %4 : vector<16x16xbf16> to vector<16x16xf32>
    %c0_7 = arith.constant 0 : index
    %c0_8 = arith.constant 0 : index
    %6 = vector.load %arg5[%c0_7, %c0_8] : memref<16x16xbf16, #tpu.memory_space<vmem>>, vector<16x16xbf16>
    %7 = arith.extf %6 : vector<16x16xbf16> to vector<16x16xf32>
    %cst = arith.constant 0.000000e+00 : f32
    %8 = vector.broadcast %cst : f32 to vector<16x128xf32>
    %c0_9 = arith.constant 0 : index
    %c0_10 = arith.constant 0 : index
    %9 = vector.load %arg6[%c0_9, %c0_10] : memref<16x128xf32, #tpu.memory_space<vmem>>, vector<16x128xf32>
    tpu.vector_store %arg6[%c0_9, %c0_10], %8 {strides = array<i32>} : memref<16x128xf32, #tpu.memory_space<vmem>>, vector<16x128xf32>,
    %10 = vector.broadcast %0 : vector<16x1xf32> to vector<16x16xf32>
    %11 = vector.broadcast %1 : vector<1x16xf32> to vector<16x16xf32>
    %12 = arith.addf %10, %11 : vector<16x16xf32>
    %cst_11 = arith.constant 0.000000e+00 : f32
    %13 = vector.broadcast %cst_11 : f32 to vector<16x16xf32>
    %14 = arith.cmpf ogt, %12, %13 : vector<16x16xf32>
    %cst_12 = arith.constant 2.000000e-01 : f32
    %15 = vector.broadcast %cst_12 : f32 to vector<16x16xf32>
    %16 = arith.mulf %15, %12 : vector<16x16xf32>
    %17 = arith.select %14, %12, %16 : vector<16x16xi1>, vector<16x16xf32>
    %18 = arith.mulf %7, %17 : vector<16x16xf32>
    %cst_13 = arith.constant dense<0.000000e+00> : vector<16xf32>
    %19 = vector.multi_reduction <add>, %18, %cst_13 [1] : vector<16x16xf32> to vector<16xf32>
    %20 = vector.shape_cast %19 : vector<16xf32> to vector<16x1xf32>
    %cst_14 = arith.constant 0.000000e+00 : f32
    %21 = vector.broadcast %cst_14 : f32 to vector<16x1xf32>
    %22 = arith.cmpf oeq, %20, %21 : vector<16x1xf32>
    %cst_15 = arith.constant 1.000000e+00 : f32
    %23 = vector.broadcast %cst_15 : f32 to vector<16x1xf32>
    %24 = arith.select %22, %23, %20 : vector<16x1xi1>, vector<16x1xf32>
    %25 = arith.mulf %5, %17 : vector<16x16xf32>
    %26 = arith.truncf %25 : vector<16x16xf32> to vector<16x16xbf16>
    %cst_16 = arith.constant dense<0.000000e+00> : vector<16x4xf32>
    %27 = tpu.matmul %26, %3, %cst_16 {dimension_numbers = #tpu.dot_dimension_numbers<[1], [0], [0], [1], [0, 0, 1, 1], [], []>} : vector<16x16xbf16>, vector<16x4xbf16>, vector<16x4xf32> -> vector<16x4xf32>
    %28 = tpu.reciprocal %24 {approx = true} : vector<16x1xf32> -> vector<16x1xf32>
    %29 = vector.broadcast %28 : vector<16x1xf32> to vector<16x4xf32>
    %30 = arith.mulf %27, %29 : vector<16x4xf32>
    %cst_17 = arith.constant 1.000000e+00 : f32
    %31 = vector.broadcast %cst_17 : f32 to vector<16x4xf32>
    %32 = arith.mulf %30, %31 : vector<16x4xf32>
    %cst_18 = arith.constant dense<0xFF800000> : vector<16xf32>
    %33 = vector.multi_reduction <maximumf>, %32, %cst_18 [1] : vector<16x4xf32> to vector<16xf32>
    %34 = vector.shape_cast %33 : vector<16xf32> to vector<16x1xf32>
    %35 = vector.broadcast %34 : vector<16x1xf32> to vector<16x4xf32>
    %36 = arith.subf %32, %35 : vector<16x4xf32>
    %37 = math.exp %36 : vector<16x4xf32>
    %cst_19 = arith.constant dense<0.000000e+00> : vector<16xf32>
    %38 = vector.multi_reduction <add>, %37, %cst_19 [1] : vector<16x4xf32> to vector<16xf32>
    %39 = vector.shape_cast %38 : vector<16xf32> to vector<16x1xf32>
    %40 = tpu.reciprocal %39 {approx = true} : vector<16x1xf32> -> vector<16x1xf32>
    %41 = vector.broadcast %40 : vector<16x1xf32> to vector<16x4xf32>
    %42 = arith.mulf %37, %41 : vector<16x4xf32>
    %c0_20 = arith.constant 0 : index
    %c0_21 = arith.constant 0 : index
    %43 = vector.load %arg6[%c0_20, %c0_21] : memref<16x128xf32, #tpu.memory_space<vmem>>, vector<16x4xf32>
    tpu.vector_store %arg6[%c0_20, %c0_21], %42 {strides = array<i32>} : memref<16x128xf32, #tpu.memory_space<vmem>>, vector<16x4xf32>,
    return
  }
  func.func @transform_0(%arg0: i32) -> (i32, i32) {
    %c0_i32 = arith.constant 0 : i32
    %c0_i32_0 = arith.constant 0 : i32
    return %arg0, %c0_i32 : i32, i32
  }
  func.func @transform_1(%arg0: i32) -> (i32, i32) {
    %c0_i32 = arith.constant 0 : i32
    %c0_i32_0 = arith.constant 0 : i32
    %c0_i32_1 = arith.constant 0 : i32
    return %c0_i32, %c0_i32_0 : i32, i32
  }
  func.func @transform_2(%arg0: i32) -> (i32, i32) {
    %c0_i32 = arith.constant 0 : i32
    %c0_i32_0 = arith.constant 0 : i32
    %c0_i32_1 = arith.constant 0 : i32
    return %c0_i32, %c0_i32_0 : i32, i32
  }
  func.func @transform_3(%arg0: i32) -> (i32, i32) {
    %c0_i32 = arith.constant 0 : i32
    %c0_i32_0 = arith.constant 0 : i32
    return %arg0, %c0_i32 : i32, i32
  }
  func.func @transform_4(%arg0: i32) -> (i32, i32) {
    %c0_i32 = arith.constant 0 : i32
    %c0_i32_0 = arith.constant 0 : i32
    return %arg0, %c0_i32 : i32, i32
  }
  func.func @transform_5(%arg0: i32) -> (i32, i32) {
    %c0_i32 = arith.constant 0 : i32
    %c0_i32_0 = arith.constant 0 : i32
    return %arg0, %c0_i32 : i32, i32
  }
}

</mosaic_0001>

<bundles_post_ra>
// kernel: _lambda_.4
= control target key start
LH: loop header
LB: loop body
LE: loop exit
PB: predicated region body
PF: predicated region fallthrough
CT: control target
= control target key end

     0   :  { %8 = vsyncpa [#allocation3], 0  ;;  %s196_s0 = inlined_call_operand.hbm [shape: f32[16,32], index: 0, kind: input, shape index: {}]   ;;  %s197_s1 = inlined_call_operand.hbm [shape: f32[32,128], index: 1, kind: input, shape index: {}]   ;;  %s198_s2 = inlined_call_operand.vmem [shape: f32[1,128], index: 2, kind: input, shape index: {}]   ;;  %s199_s3 = inlined_call_operand.vmem [shape: f32[16,128], index: 3, kind: output, shape index: {}]  }
   0x1   :  { %s14_s14 = sshll.u32 %s196_s0, 4  ;;  %s15_s14 = int_to_ptr.hbm [resolvable:$true] %s14_s14 }
   0x2   :  { %9 = vsyncpa [#allocation5], 0  ;;  %s157_s15 = smov [#allocation2]   ;;  %s27_s19 = sshll.u32 %s197_s1, 4  ;;  %s28_s19 = int_to_ptr.hbm [resolvable:$true] %s27_s19 }
   0x3   :  { %s16_s16 = sshll.u32 %s157_s15, 4  ;;  %s158_s20 = smov 128   ;;  %s17_s16 = int_to_ptr.vmem [resolvable:$true] %s16_s16 }
   0x4   :  { %s159_s21 = smov 8   ;;  %s160_s22 = smov [#allocation4]  }
   0x5   :  { %22 = dma.hbm_to_vmem [thread:$0]  %s15_s14, 256, %s17_s16, [#allocation3], %s158_s20, %s158_s20, %s159_s21  }
   0x6   :  { %s29_s23 = sshll.u32 %s160_s22, 4  ;;  %s30_s23 = int_to_ptr.vmem [resolvable:$true] %s29_s23 }
   0x7   :  { %35 = dma.hbm_to_vmem [thread:$0]  %s28_s19, 512, %s30_s23, [#allocation5], %s158_s20, %s158_s20, %s159_s21  }
   0x8   :  { %153 = dma.done.wait [#allocation3], 256  }
   0x9   :  { %154 = vsyncadd [#allocation3], 4294967040 }
   0xa   :  { %155 = dma.done.wait [#allocation5], 512  }
   0xb   :  { %156 = vsyncadd [#allocation5], 4294966784  ;;  %v51_v0 = vld [vmem:[#allocation4 + $0x18] sm:$0xff]  ;;  %v50_v1 = vld [vmem:[#allocation4 + $0x10] sm:$0xff]  ;;  %vm56_vm0 = vcmask 261120  }
   0xc   :  { %75 = vmatpush.msra.mxu0 %v51_v0  ;;  %96 = vmatpush.msra.mxu1 %v51_v0  ;;  %v49_v2 = vld [vmem:[#allocation4 + $0x8] sm:$0xff]  ;;  %v48_v3 = vld [vmem:[#allocation4] sm:$0xff]  ;;  %v46_v4 = vld [vmem:[#allocation2] sm:$0xff] }
   0xd   :  { %v47_v5 = vld [vmem:[#allocation2 + $0x8] sm:$0xff]  ;;  %v104_v6 = vld [vmem:[%s198_s2] ss:$0 sm:$0xff] }
   0xe   :  { %76 = vmatpush.msra.mxu0 %v50_v1  ;;  %97 = vmatpush.msra.mxu1 %v50_v1 }
  0x10   :  { %77 = vmatpush.msra.mxu0 %v49_v2  ;;  %98 = vmatpush.msra.mxu1 %v49_v2 }
  0x12   :  { %78 = vmatpush.msra.mxu0 %v48_v3  ;;  %99 = vmatpush.msra.mxu1 %v48_v3 }
  0x13   :  { %94 = vmatmul.msk.f32.vlgmr.msra.gmra.mxu0 %vm56_vm0, %v46_v4  ;;  %95 = vmatmul.msk.f32.vlgmr.msra.gmra.mxu1 %vm56_vm0, %v47_v5 }
  0x90   :  { %v80_v7 = vpop.f32.mrf.mxu0  ;;  %v83_v8 = vpop.f32.mrf.mxu1 }
  0x91   :  { %v81_v9 = vadd.f32 %v104_v6, %v80_v7  ;;  %v84_v10 = vadd.f32 %v104_v6, %v83_v8 }
  0x93   :  { %86 = vst [vmem:[%s199_s3] sm:$0xff] %v81_v9 }
  0x94   :  { %87 = vst [vmem:[%s199_s3 + $0x8] sm:$0xff] %v84_v10 }
  0x95   :  { %92 = vsyncpa [#allocation3], 1 }
  0x96   :  { %93 = vsyncpa [#allocation5], 1 }

// kernel: _lambda_.6
= control target key start
LH: loop header
LB: loop body
LE: loop exit
PB: predicated region body
PF: predicated region fallthrough
CT: control target
= control target key end

     0   :  { %s165_s1 = inlined_call_operand.vmem [shape: f32[128,128], index: 1, kind: input, shape index: {}]   ;;  %s166_s2 = inlined_call_operand.vmem [shape: f32[1,128], index: 2, kind: input, shape index: {}]   ;;  %s167_s0 = inlined_call_operand.vmem [shape: f32[16,128], index: 0, kind: input, shape index: {}]   ;;  %s168_s3 = inlined_call_operand.vmem [shape: f32[16,128], index: 3, kind: output, shape index: {}]  }
   0x1   :  { %v31_v0 = vld [vmem:[%s165_s1 + $0x78] sm:$0xff]  ;;  %v30_v1 = vld [vmem:[%s165_s1 + $0x70] sm:$0xff]  ;;  %v29_v2 = vld [vmem:[%s165_s1 + $0x68] sm:$0xff] }
   0x2   :  { %36 = vmatpush.msra.mxu0 %v31_v0  ;;  %65 = vmatpush.msra.mxu1 %v31_v0  ;;  %v28_v3 = vld [vmem:[%s165_s1 + $0x60] sm:$0xff]  ;;  %v27_v4 = vld [vmem:[%s165_s1 + $0x58] sm:$0xff]  ;;  %v26_v5 = vld [vmem:[%s165_s1 + $0x50] sm:$0xff] }
   0x3   :  { %v25_v6 = vld [vmem:[%s165_s1 + $0x48] sm:$0xff]  ;;  %v24_v7 = vld [vmem:[%s165_s1 + $0x40] sm:$0xff]  ;;  %v23_v8 = vld [vmem:[%s165_s1 + $0x38] sm:$0xff] }
   0x4   :  { %37 = vmatpush.msra.mxu0 %v30_v1  ;;  %66 = vmatpush.msra.mxu1 %v30_v1  ;;  %v22_v9 = vld [vmem:[%s165_s1 + $0x30] sm:$0xff]  ;;  %v21_v10 = vld [vmem:[%s165_s1 + $0x28] sm:$0xff]  ;;  %v20_v11 = vld [vmem:[%s165_s1 + $0x20] sm:$0xff] }
   0x5   :  { %v19_v12 = vld [vmem:[%s165_s1 + $0x18] sm:$0xff]  ;;  %v18_v13 = vld [vmem:[%s165_s1 + $0x10] sm:$0xff]  ;;  %v17_v14 = vld [vmem:[%s165_s1 + $0x8] sm:$0xff] }
   0x6   :  { %38 = vmatpush.msra.mxu0 %v29_v2  ;;  %67 = vmatpush.msra.mxu1 %v29_v2  ;;  %v16_v15 = vld [vmem:[%s165_s1] sm:$0xff]  ;;  %v15_v17 = vld [vmem:[%s167_s0 + $0x8] sm:$0xff] }
   0x7   :  { %v14_v16 = vld [vmem:[%s167_s0] sm:$0xff] }
   0x8   :  { %39 = vmatpush.msra.mxu0 %v28_v3  ;;  %68 = vmatpush.msra.mxu1 %v28_v3  ;;  %v81_v18 = vld [vmem:[%s166_s2] ss:$0 sm:$0xff] }
   0xa   :  { %40 = vmatpush.msra.mxu0 %v27_v4  ;;  %69 = vmatpush.msra.mxu1 %v27_v4 }
   0xc   :  { %41 = vmatpush.msra.mxu0 %v26_v5  ;;  %70 = vmatpush.msra.mxu1 %v26_v5 }
   0xe   :  { %42 = vmatpush.msra.mxu0 %v25_v6  ;;  %71 = vmatpush.msra.mxu1 %v25_v6 }
  0x10   :  { %43 = vmatpush.msra.mxu0 %v24_v7  ;;  %72 = vmatpush.msra.mxu1 %v24_v7 }
  0x12   :  { %44 = vmatpush.msra.mxu0 %v23_v8  ;;  %73 = vmatpush.msra.mxu1 %v23_v8 }
  0x14   :  { %45 = vmatpush.msra.mxu0 %v22_v9  ;;  %74 = vmatpush.msra.mxu1 %v22_v9 }
  0x16   :  { %46 = vmatpush.msra.mxu0 %v21_v10  ;;  %75 = vmatpush.msra.mxu1 %v21_v10 }
  0x18   :  { %47 = vmatpush.msra.mxu0 %v20_v11  ;;  %76 = vmatpush.msra.mxu1 %v20_v11 }
  0x1a   :  { %48 = vmatpush.msra.mxu0 %v19_v12  ;;  %77 = vmatpush.msra.mxu1 %v19_v12 }
  0x1c   :  { %49 = vmatpush.msra.mxu0 %v18_v13  ;;  %78 = vmatpush.msra.mxu1 %v18_v13 }
  0x1e   :  { %50 = vmatpush.msra.mxu0 %v17_v14  ;;  %79 = vmatpush.msra.mxu1 %v17_v14 }
  0x20   :  { %51 = vmatpush.msra.mxu0 %v16_v15  ;;  %80 = vmatpush.msra.mxu1 %v16_v15 }
  0x21   :  { %52 = vmatmul.f32.vlgmr.msra.gmra.mxu0 %v14_v16  ;;  %55 = vmatmul.f32.vlgmr.msra.gmra.mxu1 %v15_v17 }
  0x9e   :  { %v53_v19 = vpop.f32.mrf.mxu0  ;;  %v56_v20 = vpop.f32.mrf.mxu1 }
  0x9f   :  { %v54_v21 = vadd.f32 %v81_v18, %v53_v19  ;;  %v57_v22 = vadd.f32 %v81_v18, %v56_v20 }
  0xa1   :  { %59 = vst [vmem:[%s168_s3] sm:$0xff] %v54_v21 }
  0xa2   :  { %60 = vst [vmem:[%s168_s3 + $0x8] sm:$0xff] %v57_v22 }

// kernel: _lambda_.5
= control target key start
LH: loop header
LB: loop body
LE: loop exit
PB: predicated region body
PF: predicated region fallthrough
CT: control target
= control target key end

     0   :  { %v754_v0 = vmov 2   ;;  %v755_v1 = vmov 1   ;;  %v756_v3 = vmov 0   ;;  %v757_v5 = vmov 6   ;;  %s763_s6 = smov 8   ;;  %s764_s7 = smov 16   ;;  %s971_s0 = inlined_call_operand.vmem [shape: f32[16,8], index: 0, kind: input, shape index: {}]   ;;  %s972_s2 = inlined_call_operand.vmem [shape: f32[16,8], index: 2, kind: input, shape index: {}]   ;;  %s973_s1 = inlined_call_operand.vmem [shape: f32[8,16], index: 1, kind: input, shape index: {}]   ;;  %s974_s4 = inlined_call_operand.vmem [shape: bf16[16,16], index: 4, kind: input, shape index: {}]   ;;  %s975_s3 = inlined_call_operand.vmem [shape: bf16[16,16], index: 3, kind: input, shape index: {}]   ;;  %s976_s5 = inlined_call_operand.vmem [shape: f32[16,128], index: 5, kind: output, shape index: {}]  }
   0x1   :  { %678 = vset.pattern.permute.xlu1 %v754_v0  ;;  %677 = vset.pattern.permute.xlu2 %v755_v1  ;;  %v21_v2 = vld [vmem:[%s971_s0] sm:$0xff]  ;;  %v22_v4 = vld [vmem:[%s971_s0 + $0x8] sm:$0xff]  ;;  %v758_v6 = vmov 5   ;;  %v759_v7 = vmov 7   ;;  %v760_v8 = vmov 3   ;;  %v761_v9 = vmov 4  }
   0x2   :  { %676 = vset.pattern.permute.xlu0 %v756_v3  ;;  %181 = vperm.xlu1 %678, %v21_v2   ;;  %v24_v10 = vld [vmem:[%s972_s2] sm:$0xff]  ;;  %v25_v11 = vld [vmem:[%s972_s2 + $0x8] sm:$0xff]  ;;  %vm58_vm1 = vcmask 130048   ;;  %s765_s12 = smov 24   ;;  %s766_s13 = smov 32  }
   0x3   :  { %107 = vperm.xlu2 %677, %v21_v2   ;;  %39 = vperm.xlu0 %676, %v21_v2   ;;  %v26_v12 = vpack.c.bf16 %v25_v11, %v24_v10  ;;  %v815_v13 = vld [vmem:[%s973_s1] sm:$0xff]  ;;  %s767_s14 = smov 40   ;;  %s768_s15 = smov 48  }
   0x4   :  { %v114_v14 = vperm.slane %v815_v13, 1  ;;  %v657_v15 = vld [vmem:[%s974_s4] sm:$0xff]   ;;  %v188_v31 = vperm.slane %v815_v13, 2  ;;  %v47_v37 = vperm.slane %v815_v13, 0  ;;  %v262_v44 = vperm.slane %v815_v13, 3  ;;  %s769_s16 = smov 56  }
   0x5   :  { %148 = vmatpush.bf16.msra.mxu1 %v26_v12  ;;  %222 = vmatpush.bf16.msra.mxu2 %v26_v12  ;;  %v821_v18 = vunpack.c.l.bf16 %v657_v15  ;;  %v653_v22 = vld [vmem:[%s975_s3] sm:$0xff]   ;;  %v840_v38 = vunpack.c.h.bf16 %v657_v15  ;;  %v484_v58 = vperm.slane %v815_v13, 6 }
   0x6   :  { %82 = vmatpush.bf16.msra.mxu0 %v26_v12  ;;  %296 = vmatpush.bf16.msra.mxu3 %v26_v12  ;;  %v828_v26 = vunpack.c.l.bf16 %v653_v22  ;;  %v830_v27 = vunpack.c.h.bf16 %v653_v22 }
   0x9   :  { %518 = vmatpush.bf16.msrb.mxu2 %v26_v12  ;;  %444 = vmatpush.bf16.msrb.mxu1 %v26_v12 }
   0xa   :  { %682 = vset.pattern.permute.xlu1 %v757_v5  ;;  %592 = vmatpush.bf16.msrb.mxu3 %v26_v12 }
   0xb   :  { %111 = vperm.xlu2 %677, %v22_v4   ;;  %44 = vperm.xlu0 %676, %v22_v4  }
   0xc   :  { %481 = vperm.xlu1 %682, %v22_v4   ;;  %370 = vmatpush.bf16.msrb.mxu0 %v26_v12 }
  0x13   :  { %679 = vset.pattern.permute.xlu2 %v754_v0  ;;  %687 = vset.pattern.permute.xlu0 %v758_v6 }
  0x14   :  { %185 = vperm.xlu2 %679, %v22_v4   ;;  %684 = vset.pattern.permute.xlu1 %v759_v7 }
  0x15   :  { %555 = vperm.xlu1 %684, %v22_v4   ;;  %403 = vperm.xlu0 %687, %v21_v2  }
  0x1c   :  { %680 = vset.pattern.permute.xlu2 %v760_v8 }
  0x1d   :  { %255 = vperm.xlu2 %680, %v21_v2   ;;  %686 = vset.pattern.permute.xlu1 %v761_v9 }
  0x1e   :  { %333 = vperm.xlu1 %686, %v22_v4   ;;  %689 = vset.pattern.permute.xlu0 %v759_v7 }
  0x25   :  { %259 = vperm.xlu2 %680, %v22_v4  }
  0x2d   :  { %681 = vset.pattern.permute.xlu2 %v757_v5 }
  0x2e   :  { %477 = vperm.xlu2 %681, %v21_v2  }
  0x36   :  { %683 = vset.pattern.permute.xlu2 %v759_v7 }
  0x37   :  { %551 = vperm.xlu2 %683, %v21_v2  }
  0x3f   :  { %685 = vset.pattern.permute.xlu2 %v761_v9 }
  0x40   :  { %329 = vperm.xlu2 %685, %v21_v2  }
  0x48   :  { %688 = vset.pattern.permute.xlu2 %v758_v6 }
  0x49   :  { %407 = vperm.xlu2 %688, %v22_v4  }
  0x5d   :  { %v108_v16 = vpop.permute.xlu2 %107 }
  0x5e   :  { %v115_v17 = vadd.f32 %v114_v14, %v108_v16 }
  0x60   :  { %vm117_vm0 = vcmp.gt.f32.partialorder %v115_v17, 0.0  ;;  %v119_v19 = vmul.f32 0.2, %v115_v17 }
  0x62   :  { %v121_v20 = vsel %vm117_vm0, %v115_v17, %v119_v19 }
  0x63   :  { %v123_v21 = vmul.f32 %v821_v18, %v121_v20  ;;  %v135_v30 = vmul.f32 %v828_v26, %v121_v20  ;;  %v558_v20 = vperm.slane %v815_v13, 7 }
  0x65   :  { %v112_v23 = vpop.permute.xlu2 %111  ;;  %v125_v24 = vsel %vm58_vm1, %v123_v21, 0.0 }
  0x66   :  { %v116_v25 = vadd.f32 %v114_v14, %v112_v23  ;;  %126 = vadd.xlane.f32.xlu0 %v125_v24 }
  0x68   :  { %vm118_vm2 = vcmp.gt.f32.partialorder %v116_v25, 0.0  ;;  %v120_v28 = vmul.f32 0.2, %v116_v25 }
  0x6a   :  { %v832_v29 = vsel %vm118_vm2, %v116_v25, %v120_v28 }
  0x6b   :  { %v136_v32 = vmul.f32 %v830_v27, %v832_v29 }
  0x6d   :  { %v137_v33 = vpack.c.bf16 %v136_v32, %v135_v30  ;;  %v124_v30 = vmul.f32 %v840_v38, %v832_v29 }
  0x6e   :  { %v186_v34 = vpop.permute.xlu2 %185 }
  0x6f   :  { %v190_v35 = vadd.f32 %v188_v31, %v186_v34  ;;  %631 = vmatmul.msk.bf16.vlgmr.msra.gmra.mxu1 %vm58_vm1, %v137_v33 }
  0x71   :  { %vm192_vm3 = vcmp.gt.f32.partialorder %v190_v35, 0.0  ;;  %v194_v36 = vmul.f32 0.2, %v190_v35 }
  0x73   :  { %v196_v39 = vsel %vm192_vm3, %v190_v35, %v194_v36  ;;  %v128_v35 = vsel %vm58_vm1, %v124_v30, 0.0  ;;  %v336_v36 = vperm.slane %v815_v13, 4 }
  0x74   :  { %v182_v40 = vpop.permute.xlu1 %181  ;;  %v198_v41 = vmul.f32 %v840_v38, %v196_v39  ;;  %v210_v52 = vmul.f32 %v830_v27, %v196_v39 }
  0x75   :  { %v189_v42 = vadd.f32 %v188_v31, %v182_v40  ;;  %v40_v43 = vpop.permute.xlu0 %39 }
  0x76   :  { %v48_v45 = vadd.f32 %v47_v37, %v40_v43  ;;  %v202_v46 = vsel %vm58_vm1, %v198_v41, 0.0 }
  0x77   :  { %vm191_vm4 = vcmp.gt.f32.partialorder %v189_v42, 0.0  ;;  %v193_v47 = vmul.f32 0.2, %v189_v42  ;;  %v256_v48 = vpop.permute.xlu2 %255  ;;  %203 = vadd.xlane.f32.xlu0 %v202_v46 }
  0x78   :  { %vm50_vm5 = vcmp.gt.f32.partialorder %v48_v45, 0.0  ;;  %v52_v49 = vmul.f32 0.2, %v48_v45  ;;  %v263_v51 = vadd.f32 %v262_v44, %v256_v48 }
  0x79   :  { %v195_v50 = vsel %vm191_vm4, %v189_v42, %v193_v47 }
  0x7a   :  { %v54_v53 = vsel %vm50_vm5, %v48_v45, %v52_v49  ;;  %v209_v54 = vmul.f32 %v828_v26, %v195_v50  ;;  %v197_v56 = vmul.f32 %v821_v18, %v195_v50  ;;  %v267_v59 = vmul.f32 0.2, %v263_v51 }
  0x7b   :  { %v56_v55 = vmul.f32 %v821_v18, %v54_v53  ;;  %vm265_vm6 = vcmp.gt.f32.partialorder %v263_v51, 0.0  ;;  %v69_v6 = vmul.f32 %v828_v26, %v54_v53 }
  0x7c   :  { %v211_v57 = vpack.c.bf16 %v210_v52, %v209_v54  ;;  %v199_v62 = vsel %vm58_vm1, %v197_v56, 0.0  ;;  %v269_v5 = vsel %vm265_vm6, %v263_v51, %v267_v59  ;;  %v410_v54 = vperm.slane %v815_v13, 5 }
  0x7d   :  { %v45_v60 = vpop.permute.xlu0 %44  ;;  %v59_v61 = vsel %vm58_vm1, %v56_v55, 0.0  ;;  %200 = vadd.xlane.f32.xlu2 %v199_v62  ;;  %v283_v14 = vmul.f32 %v828_v26, %v269_v5  ;;  %v271_v42 = vmul.f32 %v821_v18, %v269_v5 }
  0x7e   :  { %v49_v63 = vadd.f32 %v47_v37, %v45_v60  ;;  %60 = vadd.xlane.f32.xlu1 %v59_v61  ;;  %634 = vmatmul.msk.bf16.vlgmr.msra.gmra.mxu2 %vm58_vm1, %v211_v57  ;;  %v482_v0 = vpop.permute.xlu1 %481 }
  0x7f   :  { %v260_v1 = vpop.permute.xlu2 %259  ;;  %v486_v4 = vadd.f32 %v484_v58, %v482_v0  ;;  %v273_v49 = vsel %vm58_vm1, %v271_v42, 0.0 }
  0x80   :  { %vm51_vm7 = vcmp.gt.f32.partialorder %v49_v63, 0.0  ;;  %v53_v2 = vmul.f32 0.2, %v49_v63  ;;  %v264_v3 = vadd.f32 %v262_v44, %v260_v1 }
  0x81   :  { %v490_v11 = vmul.f32 0.2, %v486_v4  ;;  %vm488_vm9 = vcmp.gt.f32.partialorder %v486_v4, 0.0 }
  0x82   :  { %vm266_vm8 = vcmp.gt.f32.partialorder %v264_v3, 0.0  ;;  %v268_v7 = vmul.f32 0.2, %v264_v3  ;;  %v55_v8 = vsel %vm51_vm7, %v49_v63, %v53_v2 }
  0x83   :  { %v57_v9 = vmul.f32 %v840_v38, %v55_v8  ;;  %v70_v10 = vmul.f32 %v830_v27, %v55_v8  ;;  %v492_v25 = vsel %vm488_vm9, %v486_v4, %v490_v11 }
  0x84   :  { %v270_v12 = vsel %vm266_vm8, %v264_v3, %v268_v7  ;;  %v506_v33 = vmul.f32 %v830_v27, %v492_v25 }
  0x85   :  { %v62_v15 = vsel %vm58_vm1, %v57_v9, 0.0  ;;  %v71_v16 = vpack.c.bf16 %v70_v10, %v69_v6  ;;  %v272_v17 = vmul.f32 %v840_v38, %v270_v12  ;;  %v284_v19 = vmul.f32 %v830_v27, %v270_v12 }
  0x86   :  { %63 = vadd.xlane.f32.xlu1 %v62_v15 }
  0x87   :  { %628 = vmatmul.msk.bf16.vlgmr.msra.gmra.mxu0 %vm58_vm1, %v71_v16  ;;  %v276_v21 = vsel %vm58_vm1, %v272_v17, 0.0  ;;  %v285_v22 = vpack.c.bf16 %v284_v19, %v283_v14  ;;  %v556_v23 = vpop.permute.xlu1 %555  ;;  %v404_v55 = vpop.permute.xlu0 %403 }
  0x88   :  { %v478_v24 = vpop.permute.xlu2 %477  ;;  %277 = vadd.xlane.f32.xlu0 %v276_v21  ;;  %v560_v31 = vadd.f32 %v558_v20, %v556_v23  ;;  %v411_v61 = vadd.f32 %v410_v54, %v404_v55 }
  0x89   :  { %v485_v28 = vadd.f32 %v484_v58, %v478_v24  ;;  %637 = vmatmul.msk.bf16.vlgmr.msra.gmra.mxu3 %vm58_vm1, %v285_v22  ;;  %v494_v58 = vmul.f32 %v840_v38, %v492_v25 }
  0x8a   :  { %v564_v39 = vmul.f32 0.2, %v560_v31  ;;  %vm562_vm11 = vcmp.gt.f32.partialorder %v560_v31, 0.0  ;;  %v415_v13 = vmul.f32 0.2, %v411_v61  ;;  %vm413_vm15 = vcmp.gt.f32.partialorder %v411_v61, 0.0 }
  0x8b   :  { %vm487_vm10 = vcmp.gt.f32.partialorder %v485_v28, 0.0  ;;  %v489_v32 = vmul.f32 0.2, %v485_v28  ;;  %v498_v63 = vsel %vm58_vm1, %v494_v58, 0.0 }
  0x8c   :  { %v566_v44 = vsel %vm562_vm11, %v560_v31, %v564_v39  ;;  %v417_v8 = vsel %vm413_vm15, %v411_v61, %v415_v13  ;;  %vm103_vm11 = vcmask 64512  }
  0x8d   :  { %v867_v34 = vsel %vm487_vm10, %v485_v28, %v489_v32  ;;  %v580_v48 = vmul.f32 %v830_v27, %v566_v44  ;;  %v568_v4 = vmul.f32 %v840_v38, %v566_v44  ;;  %v419_v12 = vmul.f32 %v821_v18, %v417_v8 }
  0x8e   :  { %v505_v37 = vmul.f32 %v828_v26, %v867_v34  ;;  %129 = vadd.xlane.f32.xlu1 %v128_v35  ;;  %v431_v16 = vmul.f32 %v828_v26, %v417_v8  ;;  %v493_v22 = vmul.f32 %v821_v18, %v867_v34  ;;  %v762_v34 = vmov 0.0  }
  0x8f   :  { %v572_v10 = vsel %vm58_vm1, %v568_v4, 0.0  ;;  %v421_v17 = vsel %vm58_vm1, %v419_v12, 0.0  ;;  %35 = vst [vmem:[%s976_s5] sm:$0xff] %v762_v34 }
  0x90   :  { %v507_v40 = vpack.c.bf16 %v506_v33, %v505_v37  ;;  %v334_v41 = vpop.permute.xlu1 %333  ;;  %v495_v23 = vsel %vm58_vm1, %v493_v22, 0.0  ;;  %36 = vst [vmem:[%s976_s5 + $0x8] sm:$0xff] %v762_v34 }
  0x91   :  { %v552_v29 = vpop.permute.xlu2 %551  ;;  %v338_v43 = vadd.f32 %v336_v36, %v334_v41 }
  0x92   :  { %v559_v45 = vadd.f32 %v558_v20, %v552_v29  ;;  %646 = vmatmul.msk.bf16.vlgmr.msrb.gmra.mxu2 %vm58_vm1, %v507_v40 }
  0x93   :  { %vm340_vm12 = vcmp.gt.f32.partialorder %v338_v43, 0.0  ;;  %v342_v46 = vmul.f32 0.2, %v338_v43 }
  0x94   :  { %vm561_vm13 = vcmp.gt.f32.partialorder %v559_v45, 0.0  ;;  %v563_v47 = vmul.f32 0.2, %v559_v45 }
  0x95   :  { %v344_v50 = vsel %vm340_vm12, %v338_v43, %v342_v46 }
  0x96   :  { %v565_v51 = vsel %vm561_vm13, %v559_v45, %v563_v47  ;;  %274 = vadd.xlane.f32.xlu1 %v273_v49  ;;  %v346_v52 = vmul.f32 %v840_v38, %v344_v50  ;;  %v358_v0 = vmul.f32 %v830_v27, %v344_v50 }
  0x97   :  { %v579_v53 = vmul.f32 %v828_v26, %v565_v51 }
  0x98   :  { %v350_v56 = vsel %vm58_vm1, %v346_v52, 0.0 }
  0x99   :  { %v581_v57 = vpack.c.bf16 %v580_v48, %v579_v53  ;;  %351 = vadd.xlane.f32.xlu2 %v350_v56 }
  0x9a   :  { %v330_v59 = vpop.permute.xlu2 %329 }
  0x9b   :  { %v337_v60 = vadd.f32 %v336_v36, %v330_v59  ;;  %649 = vmatmul.msk.bf16.vlgmr.msrb.gmra.mxu3 %vm58_vm1, %v581_v57 }
  0x9d   :  { %vm339_vm14 = vcmp.gt.f32.partialorder %v337_v60, 0.0  ;;  %v341_v62 = vmul.f32 0.2, %v337_v60 }
  0x9e   :  { %499 = vadd.xlane.f32.xlu1 %v498_v63 }
  0x9f   :  { %v343_v1 = vsel %vm339_vm14, %v337_v60, %v341_v62 }
  0xa0   :  { %v345_v2 = vmul.f32 %v821_v18, %v343_v1  ;;  %v357_v3 = vmul.f32 %v828_v26, %v343_v1 }
  0xa2   :  { %v347_v5 = vsel %vm58_vm1, %v345_v2, 0.0  ;;  %v359_v6 = vpack.c.bf16 %v358_v0, %v357_v3 }
  0xa3   :  { %v408_v7 = vpop.permute.xlu2 %407  ;;  %348 = vadd.xlane.f32.xlu0 %v347_v5 }
  0xa4   :  { %v412_v9 = vadd.f32 %v410_v54, %v408_v7  ;;  %640 = vmatmul.msk.bf16.vlgmr.msrb.gmra.mxu0 %vm58_vm1, %v359_v6 }
  0xa6   :  { %vm414_vm0 = vcmp.gt.f32.partialorder %v412_v9, 0.0  ;;  %v416_v11 = vmul.f32 0.2, %v412_v9  ;;  %573 = vadd.xlane.f32.xlu1 %v572_v10 }
  0xa8   :  { %v418_v14 = vsel %vm414_vm0, %v412_v9, %v416_v11 }
  0xa9   :  { %v432_v15 = vmul.f32 %v830_v27, %v418_v14  ;;  %v420_v20 = vmul.f32 %v840_v38, %v418_v14  ;;  %v567_v27 = vmul.f32 %v821_v18, %v565_v51 }
  0xab   :  { %v433_v19 = vpack.c.bf16 %v432_v15, %v431_v16  ;;  %422 = vadd.xlane.f32.xlu0 %v421_v17  ;;  %v424_v21 = vsel %vm58_vm1, %v420_v20, 0.0  ;;  %v569_v26 = vsel %vm58_vm1, %v567_v27, 0.0 }
  0xad   :  { %643 = vmatmul.msk.bf16.vlgmr.msrb.gmra.mxu1 %vm58_vm1, %v433_v19 }
  0xb3   :  { %425 = vadd.xlane.f32.xlu0 %v424_v21 }
  0xbb   :  { %496 = vadd.xlane.f32.xlu0 %v495_v23 }
  0xc3   :  { %570 = vadd.xlane.f32.xlu0 %v569_v26 }
  0xd9   :  { %v127_v24 = vpop.xlane.xlu0 %126 }
  0xda   :  { %vm131_vm2 = vcmp.eq.f32.partialorder %v127_v24, 0.0 }
  0xdb   :  { %v133_v25 = vsel %vm131_vm2, 1.0, %v127_v24 }
  0xdc   :  { %690 = vrcp.f32 %v133_v25 }
  0xe2   :  { %v691_v28 = vpop.eup %690 }
  0xea   :  { %v204_v41 = vpop.xlane.xlu0 %203 }
  0xeb   :  { %vm206_vm6 = vcmp.eq.f32.partialorder %v204_v41, 0.0 }
  0xec   :  { %v150_v38 = vpop.f32.mrf.mxu1  ;;  %v208_v48 = vsel %vm206_vm6, 1.0, %v204_v41 }
  0xed   :  { %v157_v30 = vmul.f32 %v691_v28, %v150_v38 }
  0xef   :  { %v161_v31 = vmul.f32 1.442695, %v157_v30  ;;  %vm159_vm1 = vcmp.gt.f32.partialorder %v157_v30, 0.0 }
  0xf0   :  { %v201_v33 = vpop.xlane.xlu2 %200 }
  0xf1   :  { %692 = vpow2.f32 %v161_v31  ;;  %v61_v32 = vpop.xlane.xlu1 %60  ;;  %vm205_vm3 = vcmp.eq.f32.partialorder %v201_v33, 0.0 }
  0xf2   :  { %vm65_vm4 = vcmp.eq.f32.partialorder %v61_v32, 0.0  ;;  %v207_v18 = vsel %vm205_vm3, 1.0, %v201_v33 }
  0xf3   :  { %v67_v37 = vsel %vm65_vm4, 1.0, %v61_v32  ;;  %694 = vrcp.f32 %v207_v18 }
  0xf4   :  { %696 = vrcp.f32 %v67_v37  ;;  %v152_v56 = vpop.f32.mrf.mxu1 }
  0xf7   :  { %v693_v35 = vpop.eup %692 }
  0xf8   :  { %v632_v36 = vadd.f32 -1.0, %v693_v35 }
  0xf9   :  { %v64_v39 = vpop.xlane.xlu1 %63  ;;  %v695_v29 = vpop.eup %694 }
  0xfa   :  { %v167_v40 = vsel %vm159_vm1, %v157_v30, %v632_v36  ;;  %vm66_vm5 = vcmp.eq.f32.partialorder %v64_v39, 0.0  ;;  %v697_v44 = vpop.eup %696 }
  0xfb   :  { %171 = vrot.lane.b32.xlu2 %v167_v40, %s763_s6  ;;  %v68_v45 = vsel %vm66_vm5, 1.0, %v64_v39  ;;  %v278_v51 = vpop.xlane.xlu0 %277 }
  0xfc   :  { %vm280_vm8 = vcmp.eq.f32.partialorder %v278_v51, 0.0 }
  0xfd   :  { %v282_v58 = vsel %vm280_vm8, 1.0, %v278_v51 }
 0x101   :  { %v130_v42 = vpop.xlane.xlu1 %129  ;;  %v224_v43 = vpop.f32.mrf.mxu2 }
 0x102   :  { %vm132_vm7 = vcmp.eq.f32.partialorder %v130_v42, 0.0  ;;  %v231_v46 = vmul.f32 %v695_v29, %v224_v43 }
 0x103   :  { %v134_v47 = vsel %vm132_vm7, 1.0, %v130_v42 }
 0x104   :  { %698 = vrcp.f32 %v134_v47  ;;  %v235_v49 = vmul.f32 1.442695, %v231_v46  ;;  %v84_v50 = vpop.f32.mrf.mxu0  ;;  %vm233_vm10 = vcmp.gt.f32.partialorder %v231_v46, 0.0 }
 0x105   :  { %700 = vrcp.f32 %v68_v45  ;;  %v91_v52 = vmul.f32 %v697_v44, %v84_v50 }
 0x106   :  { %702 = vpow2.f32 %v235_v49 }
 0x107   :  { %704 = vrcp.f32 %v208_v48  ;;  %v95_v53 = vmul.f32 1.442695, %v91_v52  ;;  %vm93_vm12 = vcmp.gt.f32.partialorder %v91_v52, 0.0 }
 0x109   :  { %706 = vpow2.f32 %v95_v53  ;;  %v275_v54 = vpop.xlane.xlu1 %274  ;;  %v226_v60 = vpop.f32.mrf.mxu2 }
 0x10a   :  { %v699_v55 = vpop.eup %698  ;;  %vm279_vm9 = vcmp.eq.f32.partialorder %v275_v54, 0.0 }
 0x10b   :  { %v701_v57 = vpop.eup %700  ;;  %v281_v59 = vsel %vm279_vm9, 1.0, %v275_v54  ;;  %v158_v61 = vmul.f32 %v699_v55, %v152_v56 }
 0x10c   :  { %v703_v62 = vpop.eup %702  ;;  %708 = vrcp.f32 %v281_v59  ;;  %v86_v63 = vpop.f32.mrf.mxu0 }
 0x10d   :  { %v298_v0 = vpop.f32.mrf.mxu3  ;;  %v705_v13 = vpop.eup %704  ;;  %v92_v1 = vmul.f32 %v701_v57, %v86_v63  ;;  %v635_v2 = vadd.f32 -1.0, %v703_v62  ;;  %710 = vrcp.f32 %v282_v58  ;;  %v163_v4 = vmul.f32 1.442695, %v158_v61 }
 0x10e   :  { %v910_v3 = vmul.f32 %v705_v13, %v226_v60  ;;  %v352_v26 = vpop.xlane.xlu2 %351  ;;  %vm160_vm15 = vcmp.gt.f32.partialorder %v158_v61, 0.0 }
 0x10f   :  { %v707_v5 = vpop.eup %706  ;;  %v97_v6 = vmul.f32 1.442695, %v92_v1  ;;  %v241_v7 = vsel %vm233_vm10, %v231_v46, %v635_v2  ;;  %vm94_vm14 = vcmp.gt.f32.partialorder %v92_v1, 0.0  ;;  %vm354_vm0 = vcmp.eq.f32.partialorder %v352_v26, 0.0 }
 0x110   :  { %v629_v8 = vadd.f32 -1.0, %v707_v5  ;;  %245 = vrot.lane.b32.xlu1 %v241_v7, %s764_s7  ;;  %v237_v11 = vmul.f32 1.442695, %v910_v3  ;;  %v356_v35 = vsel %vm354_vm0, 1.0, %v352_v26  ;;  %vm234_vm5 = vcmp.gt.f32.partialorder %v910_v3, 0.0 }
 0x111   :  { %712 = vpow2.f32 %v97_v6  ;;  %v500_v28 = vpop.xlane.xlu1 %499 }
 0x112   :  { %v709_v9 = vpop.eup %708  ;;  %v101_v10 = vsel %vm93_vm12, %v91_v52, %v629_v8  ;;  %714 = vpow2.f32 %v163_v4  ;;  %vm502_vm2 = vcmp.eq.f32.partialorder %v500_v28, 0.0 }
 0x113   :  { %v305_v12 = vmul.f32 %v709_v9, %v298_v0  ;;  %104 = vst.msk [vmem:[%s976_s5] sm:$0xff] %vm103_vm11, %v101_v10  ;;  %v711_v14 = vpop.eup %710  ;;  %716 = vpow2.f32 %v237_v11  ;;  %v504_v37 = vsel %vm502_vm2, 1.0, %v500_v28 }
 0x115   :  { %v300_v15 = vpop.f32.mrf.mxu3  ;;  %v309_v16 = vmul.f32 1.442695, %v305_v12  ;;  %v923_v32 = vpop.f32.mrf.mxu2  ;;  %vm307_vm4 = vcmp.gt.f32.partialorder %v305_v12, 0.0 }
 0x116   :  { %v306_v17 = vmul.f32 %v711_v14, %v300_v15  ;;  %v349_v19 = vpop.xlane.xlu0 %348 }
 0x117   :  { %v713_v20 = vpop.eup %712  ;;  %718 = vpow2.f32 %v309_v16  ;;  %vm353_vm13 = vcmp.eq.f32.partialorder %v349_v19, 0.0 }
 0x118   :  { %v311_v21 = vmul.f32 1.442695, %v306_v17  ;;  %v715_v22 = vpop.eup %714  ;;  %v630_v23 = vadd.f32 -1.0, %v713_v20  ;;  %v355_v27 = vsel %vm353_vm13, 1.0, %v349_v19  ;;  %vm308_vm1 = vcmp.gt.f32.partialorder %v306_v17, 0.0 }
 0x119   :  { %v633_v24 = vadd.f32 -1.0, %v715_v22  ;;  %v717_v30 = vpop.eup %716  ;;  %v574_v48 = vpop.xlane.xlu1 %573 }
 0x11a   :  { %720 = vpow2.f32 %v311_v21  ;;  %v102_v25 = vsel %vm94_vm14, %v92_v1, %v630_v23  ;;  %v636_v36 = vadd.f32 -1.0, %v717_v30  ;;  %vm576_vm7 = vcmp.eq.f32.partialorder %v574_v48, 0.0 }
 0x11b   :  { %722 = vrcp.f32 %v355_v27  ;;  %v168_v38 = vsel %vm160_vm15, %v158_v61, %v633_v24  ;;  %105 = vst.msk [vmem:[%s976_s5 + $0x8] sm:$0xff] %vm103_vm11, %v102_v25  ;;  %v578_v62 = vsel %vm576_vm7, 1.0, %v574_v48  ;;  %vm547_vm7 = vcmask 458112  }
 0x11c   :  { %173 = vrot.lane.b32.xlu2 %v168_v38, %s763_s6  ;;  %724 = vrcp.f32 %v356_v35  ;;  %v242_v45 = vsel %vm234_vm5, %v910_v3, %v636_v36  ;;  %vm399_vm5 = vcmask 326912  }
 0x11d   :  { %v719_v31 = vpop.eup %718  ;;  %726 = vrcp.f32 %v504_v37  ;;  %v522_v50 = vpop.f32.mrf.mxu2 }
 0x11e   :  { %v423_v33 = vpop.xlane.xlu0 %422  ;;  %v638_v34 = vadd.f32 -1.0, %v719_v31  ;;  %v594_v58 = vpop.f32.mrf.mxu3 }
 0x11f   :  { %vm427_vm3 = vcmp.eq.f32.partialorder %v423_v33, 0.0 }
 0x120   :  { %v721_v18 = vpop.eup %720  ;;  %v315_v39 = vsel %vm307_vm4, %v305_v12, %v638_v34  ;;  %v429_v29 = vsel %vm427_vm3, 1.0, %v423_v33  ;;  %vm177_vm3 = vcmask 130112   ;;  %vm251_vm4 = vcmask 195712  }
 0x121   :  { %v639_v40 = vadd.f32 -1.0, %v721_v18  ;;  %v723_v41 = vpop.eup %722  ;;  %v372_v42 = vpop.f32.mrf.mxu0  ;;  %319 = vrot.lane.b32.xlu0 %v315_v39, %s765_s12  ;;  %728 = vrcp.f32 %v429_v29 }
 0x122   :  { %v379_v43 = vmul.f32 %v723_v41, %v372_v42  ;;  %v725_v49 = vpop.eup %724 }
 0x123   :  { %v316_v44 = vsel %vm308_vm1, %v306_v17, %v639_v40  ;;  %v727_v51 = vpop.eup %726  ;;  %vm325_vm1 = vcmask 261312  }
 0x124   :  { %321 = vrot.lane.b32.xlu1 %v316_v44, %s765_s12  ;;  %v383_v46 = vmul.f32 1.442695, %v379_v43  ;;  %247 = vrot.lane.b32.xlu2 %v242_v45, %s764_s7  ;;  %v528_v57 = vmul.f32 %v727_v51, %v522_v50  ;;  %vm381_vm8 = vcmp.gt.f32.partialorder %v379_v43, 0.0 }
 0x126   :  { %730 = vpow2.f32 %v383_v46  ;;  %v426_v47 = vpop.xlane.xlu0 %425  ;;  %v533_v1 = vmul.f32 1.442695, %v528_v57  ;;  %v596_v9 = vpop.f32.mrf.mxu3  ;;  %vm530_vm13 = vcmp.gt.f32.partialorder %v528_v57, 0.0 }
 0x127   :  { %vm428_vm6 = vcmp.eq.f32.partialorder %v426_v47, 0.0  ;;  %v729_v54 = vpop.eup %728 }
 0x128   :  { %v430_v52 = vsel %vm428_vm6, 1.0, %v426_v47  ;;  %vm473_vm6 = vcmask 392512  }
 0x129   :  { %v374_v53 = vpop.f32.mrf.mxu0  ;;  %732 = vrcp.f32 %v430_v52 }
 0x12a   :  { %v380_v55 = vmul.f32 %v725_v49, %v374_v53  ;;  %v446_v56 = vpop.f32.mrf.mxu1 }
 0x12b   :  { %v453_v59 = vmul.f32 %v729_v54, %v446_v56 }
 0x12c   :  { %v731_v60 = vpop.eup %730  ;;  %v385_v61 = vmul.f32 1.442695, %v380_v55  ;;  %vm382_vm10 = vcmp.gt.f32.partialorder %v380_v55, 0.0 }
 0x12d   :  { %v457_v63 = vmul.f32 1.442695, %v453_v59  ;;  %v641_v0 = vadd.f32 -1.0, %v731_v60  ;;  %vm455_vm12 = vcmp.gt.f32.partialorder %v453_v59, 0.0 }
 0x12e   :  { %734 = vpow2.f32 %v385_v61  ;;  %v497_v13 = vpop.xlane.xlu0 %496 }
 0x12f   :  { %736 = vpow2.f32 %v457_v63  ;;  %vm501_vm9 = vcmp.eq.f32.partialorder %v497_v13, 0.0  ;;  %v389_v2 = vsel %vm381_vm8, %v379_v43, %v641_v0  ;;  %v733_v4 = vpop.eup %732  ;;  %vm621_vm8 = vcmask 523712  }
 0x130   :  { %738 = vrcp.f32 %v578_v62  ;;  %v503_v3 = vsel %vm501_vm9, 1.0, %v497_v13  ;;  %393 = vrot.lane.b32.xlu2 %v389_v2, %s766_s13 }
 0x131   :  { %740 = vrcp.f32 %v503_v3 }
 0x132   :  { %v448_v5 = vpop.f32.mrf.mxu1  ;;  %742 = vpow2.f32 %v533_v1 }
 0x133   :  { %v454_v6 = vmul.f32 %v733_v4, %v448_v5 }
 0x134   :  { %v735_v7 = vpop.eup %734 }
 0x135   :  { %v737_v8 = vpop.eup %736  ;;  %v459_v10 = vmul.f32 1.442695, %v454_v6  ;;  %v642_v11 = vadd.f32 -1.0, %v735_v7  ;;  %vm456_vm14 = vcmp.gt.f32.partialorder %v454_v6, 0.0 }
 0x136   :  { %v739_v12 = vpop.eup %738  ;;  %v571_v14 = vpop.xlane.xlu0 %570  ;;  %v644_v15 = vadd.f32 -1.0, %v737_v8 }
 0x137   :  { %v741_v16 = vpop.eup %740  ;;  %744 = vpow2.f32 %v459_v10  ;;  %vm575_vm11 = vcmp.eq.f32.partialorder %v571_v14, 0.0  ;;  %v390_v17 = vsel %vm382_vm10, %v380_v55, %v642_v11  ;;  %v602_v19 = vmul.f32 %v739_v12, %v596_v9 }
 0x138   :  { %v577_v20 = vsel %vm575_vm11, 1.0, %v571_v14  ;;  %395 = vrot.lane.b32.xlu0 %v390_v17, %s766_s13  ;;  %v463_v21 = vsel %vm455_vm12, %v453_v59, %v644_v15  ;;  %v527_v22 = vmul.f32 %v741_v16, %v923_v32  ;;  %v743_v23 = vpop.eup %742 }
 0x139   :  { %746 = vrcp.f32 %v577_v20  ;;  %467 = vrot.lane.b32.xlu1 %v463_v21, %s767_s14  ;;  %v607_v26 = vmul.f32 1.442695, %v602_v19  ;;  %v648_v24 = vadd.f32 -1.0, %v743_v23  ;;  %vm604_vm0 = vcmp.gt.f32.partialorder %v602_v19, 0.0 }
 0x13a   :  { %v531_v27 = vmul.f32 1.442695, %v527_v22  ;;  %vm529_vm15 = vcmp.gt.f32.partialorder %v527_v22, 0.0 }
 0x13b   :  { %v538_v30 = vsel %vm530_vm13, %v528_v57, %v648_v24 }
 0x13c   :  { %748 = vpow2.f32 %v531_v27 }
 0x13d   :  { %v745_v25 = vpop.eup %744  ;;  %750 = vpow2.f32 %v607_v26 }
 0x13e   :  { %v645_v28 = vadd.f32 -1.0, %v745_v25 }
 0x13f   :  { %v747_v38 = vpop.eup %746 }
 0x140   :  { %v464_v31 = vsel %vm456_vm14, %v454_v6, %v645_v28  ;;  %v601_v33 = vmul.f32 %v747_v38, %v594_v58 }
 0x141   :  { %543 = vrot.lane.b32.xlu1 %v538_v30, %s768_s15  ;;  %469 = vrot.lane.b32.xlu0 %v464_v31, %s767_s14 }
 0x142   :  { %v749_v32 = vpop.eup %748  ;;  %v605_v34 = vmul.f32 1.442695, %v601_v33  ;;  %vm603_vm2 = vcmp.gt.f32.partialorder %v601_v33, 0.0 }
 0x143   :  { %v647_v18 = vadd.f32 -1.0, %v749_v32  ;;  %v751_v36 = vpop.eup %750 }
 0x144   :  { %752 = vpow2.f32 %v605_v34  ;;  %v651_v37 = vadd.f32 -1.0, %v751_v36 }
 0x145   :  { %v537_v35 = vsel %vm529_vm15, %v527_v22, %v647_v18 }
 0x146   :  { %541 = vrot.lane.b32.xlu2 %v537_v35, %s768_s15  ;;  %v612_v41 = vsel %vm604_vm0, %v602_v19, %v651_v37 }
 0x14a   :  { %v753_v39 = vpop.eup %752 }
 0x14b   :  { %v650_v40 = vadd.f32 -1.0, %v753_v39 }
 0x14d   :  { %v611_v29 = vsel %vm603_vm2, %v601_v33, %v650_v40 }
 0x14e   :  { %617 = vrot.lane.b32.xlu2 %v612_v41, %s769_s16  ;;  %615 = vrot.lane.b32.xlu0 %v611_v29, %s769_s16 }
 0x155   :  { %v172_v42 = vpop.permute.xlu2 %171 }
 0x156   :  { %178 = vst.msk [vmem:[%s976_s5] sm:$0xff] %vm177_vm3, %v172_v42 }
 0x176   :  { %v174_v43 = vpop.permute.xlu2 %173 }
 0x177   :  { %179 = vst.msk [vmem:[%s976_s5 + $0x8] sm:$0xff] %vm177_vm3, %v174_v43 }
 0x17e   :  { %v248_v44 = vpop.permute.xlu2 %247 }
 0x17f   :  { %253 = vst.msk [vmem:[%s976_s5 + $0x8] sm:$0xff] %vm251_vm4, %v248_v44 }
 0x182   :  { %v246_v45 = vpop.permute.xlu1 %245 }
 0x183   :  { %252 = vst.msk [vmem:[%s976_s5] sm:$0xff] %vm251_vm4, %v246_v45 }
 0x18a   :  { %v394_v47 = vpop.permute.xlu2 %393 }
 0x193   :  { %v320_v46 = vpop.permute.xlu0 %319 }
 0x194   :  { %326 = vst.msk [vmem:[%s976_s5] sm:$0xff] %vm325_vm1, %v320_v46 }
 0x195   :  { %400 = vst.msk [vmem:[%s976_s5] sm:$0xff] %vm399_vm5, %v394_v47 }
 0x196   :  { %v322_v48 = vpop.permute.xlu1 %321 }
 0x197   :  { %327 = vst.msk [vmem:[%s976_s5 + $0x8] sm:$0xff] %vm325_vm1, %v322_v48 }
 0x1a0   :  { %v542_v50 = vpop.permute.xlu2 %541 }
 0x1a8   :  { %v618_v54 = vpop.permute.xlu2 %617 }
 0x1aa   :  { %v396_v49 = vpop.permute.xlu0 %395 }
 0x1ab   :  { %401 = vst.msk [vmem:[%s976_s5 + $0x8] sm:$0xff] %vm399_vm5, %v396_v49  ;;  %v468_v51 = vpop.permute.xlu1 %467 }
 0x1ac   :  { %474 = vst.msk [vmem:[%s976_s5] sm:$0xff] %vm473_vm6, %v468_v51 }
 0x1ad   :  { %548 = vst.msk [vmem:[%s976_s5] sm:$0xff] %vm547_vm7, %v542_v50 }
 0x1b3   :  { %v544_v52 = vpop.permute.xlu1 %543  ;;  %v470_v53 = vpop.permute.xlu0 %469 }
 0x1b4   :  { %475 = vst.msk [vmem:[%s976_s5 + $0x8] sm:$0xff] %vm473_vm6, %v470_v53 }
 0x1b5   :  { %549 = vst.msk [vmem:[%s976_s5 + $0x8] sm:$0xff] %vm547_vm7, %v544_v52 }
 0x1b6   :  { %623 = vst.msk [vmem:[%s976_s5 + $0x8] sm:$0xff] %vm621_vm8, %v618_v54 }
 0x1c0   :  { %v616_v55 = vpop.permute.xlu0 %615 }
 0x1c1   :  { %622 = vst.msk [vmem:[%s976_s5] sm:$0xff] %vm621_vm8, %v616_v55 }

// kernel: _lambda_.7
= control target key start
LH: loop header
LB: loop body
LE: loop exit
PB: predicated region body
PF: predicated region fallthrough
CT: control target
= control target key end

     0   :  { %v149_v0 = vmov 0   ;;  %vm60_vm1 = vcmask 130048   ;;  %vm95_vm5 = vcmask 31744   ;;  %v150_v40 = vmov 0.0   ;;  %s223_s0 = inlined_call_operand.vmem [shape: f32[16,1], index: 0, kind: input, shape index: {}]   ;;  %s224_s1 = inlined_call_operand.vmem [shape: f32[1,16], index: 1, kind: input, shape index: {}]   ;;  %s225_s2 = inlined_call_operand.vmem [shape: f32[16,4], index: 2, kind: input, shape index: {}]   ;;  %s226_s4 = inlined_call_operand.vmem [shape: bf16[16,16], index: 4, kind: input, shape index: {}]   ;;  %s227_s3 = inlined_call_operand.vmem [shape: bf16[16,16], index: 3, kind: input, shape index: {}]   ;;  %s228_s5 = inlined_call_operand.vmem [shape: f32[16,128], index: 5, kind: output, shape index: {}]  }
   0x1   :  { %135 = vset.pattern.permute.xlu0 %v149_v0  ;;  %v21_v1 = vld [vmem:[%s223_s0] sm:$0xff]  ;;  %v22_v2 = vld [vmem:[%s223_s0 + $0x8] sm:$0xff]  ;;  %35 = vst [vmem:[%s228_s5] sm:$0xff] %v150_v40 }
   0x2   :  { %39 = vperm.xlu0 %135, %v21_v1   ;;  %v24_v3 = vld [vmem:[%s225_s2] sm:$0xff]  ;;  %v25_v4 = vld [vmem:[%s225_s2 + $0x8] sm:$0xff]  ;;  %36 = vst [vmem:[%s228_s5 + $0x8] sm:$0xff] %v150_v40 }
   0x3   :  { %v26_v5 = vpack.c.bf16 %v25_v4, %v24_v3  ;;  %v136_v6 = vld [vmem:[%s224_s1] ss:$0 sm:$0xff] }
   0x4   :  { %v130_v7 = vld [vmem:[%s226_s4] sm:$0xff]  }
   0x5   :  { %84 = vmatpush.bf16.msra.mxu0 %v26_v5  ;;  %v131_v10 = vunpack.c.l.bf16 %v130_v7  ;;  %v126_v14 = vld [vmem:[%s227_s3] sm:$0xff]   ;;  %v132_v20 = vunpack.c.h.bf16 %v130_v7 }
   0x6   :  { %v127_v18 = vunpack.c.l.bf16 %v126_v14  ;;  %v128_v19 = vunpack.c.h.bf16 %v126_v14 }
   0xa   :  { %44 = vperm.xlu0 %135, %v22_v2  }
  0x74   :  { %v40_v8 = vpop.permute.xlu0 %39 }
  0x75   :  { %v50_v9 = vadd.f32 %v136_v6, %v40_v8 }
  0x77   :  { %v54_v11 = vmul.f32 0.2, %v50_v9  ;;  %vm52_vm0 = vcmp.gt.f32.partialorder %v50_v9, 0.0 }
  0x79   :  { %v56_v12 = vsel %vm52_vm0, %v50_v9, %v54_v11 }
  0x7a   :  { %v58_v13 = vmul.f32 %v131_v10, %v56_v12  ;;  %v71_v23 = vmul.f32 %v127_v18, %v56_v12 }
  0x7c   :  { %v45_v15 = vpop.permute.xlu0 %44  ;;  %v61_v16 = vsel %vm60_vm1, %v58_v13, 0.0 }
  0x7d   :  { %v51_v17 = vadd.f32 %v136_v6, %v45_v15  ;;  %62 = vadd.xlane.f32.xlu1 %v61_v16 }
  0x7f   :  { %vm53_vm2 = vcmp.gt.f32.partialorder %v51_v17, 0.0  ;;  %v55_v21 = vmul.f32 0.2, %v51_v17 }
  0x81   :  { %v57_v22 = vsel %vm53_vm2, %v51_v17, %v55_v21 }
  0x82   :  { %v59_v24 = vmul.f32 %v132_v20, %v57_v22  ;;  %v72_v25 = vmul.f32 %v128_v19, %v57_v22 }
  0x84   :  { %v64_v26 = vsel %vm60_vm1, %v59_v24, 0.0  ;;  %v73_v27 = vpack.c.bf16 %v72_v25, %v71_v23 }
  0x85   :  { %65 = vadd.xlane.f32.xlu1 %v64_v26 }
  0x86   :  { %124 = vmatmul.msk.bf16.vlgmr.msra.gmra.mxu0 %vm60_vm1, %v73_v27 }
  0xf0   :  { %v63_v28 = vpop.xlane.xlu1 %62 }
  0xf1   :  { %vm67_vm3 = vcmp.eq.f32.partialorder %v63_v28, 0.0 }
  0xf2   :  { %v69_v29 = vsel %vm67_vm3, 1.0, %v63_v28 }
  0xf3   :  { %137 = vrcp.f32 %v69_v29 }
  0xf8   :  { %v66_v30 = vpop.xlane.xlu1 %65 }
  0xf9   :  { %vm68_vm4 = vcmp.eq.f32.partialorder %v66_v30, 0.0  ;;  %v138_v32 = vpop.eup %137 }
  0xfa   :  { %v70_v31 = vsel %vm68_vm4, 1.0, %v66_v30 }
  0xfb   :  { %139 = vrcp.f32 %v70_v31 }
 0x101   :  { %v140_v36 = vpop.eup %139 }
 0x103   :  { %v86_v33 = vpop.f32.mrf.mxu0 }
 0x104   :  { %v93_v34 = vmul.f32 %v138_v32, %v86_v33 }
 0x106   :  { %v96_v35 = vsel %vm95_vm5, %v93_v34, -inf }
 0x107   :  { %97 = vmax.xlane.f32.xlu2 %v96_v35 }
 0x10b   :  { %v88_v37 = vpop.f32.mrf.mxu0 }
 0x10c   :  { %v94_v38 = vmul.f32 %v140_v36, %v88_v37 }
 0x10e   :  { %v99_v39 = vsel %vm95_vm5, %v94_v38, -inf }
 0x10f   :  { %100 = vmax.xlane.f32.xlu2 %v99_v39 }
 0x17a   :  { %v98_v41 = vpop.xlane.xlu2 %97 }
 0x17b   :  { %v102_v42 = vsub.f32 %v93_v34, %v98_v41 }
 0x17d   :  { %v104_v43 = vmul.f32 1.442695, %v102_v42 }
 0x17f   :  { %141 = vpow2.f32 %v104_v43 }
 0x182   :  { %v101_v44 = vpop.xlane.xlu2 %100 }
 0x183   :  { %v103_v45 = vsub.f32 %v94_v38, %v101_v44 }
 0x185   :  { %v142_v46 = vpop.eup %141  ;;  %v106_v47 = vmul.f32 1.442695, %v103_v45 }
 0x186   :  { %v108_v48 = vsel %vm95_vm5, %v142_v46, 0.0 }
 0x187   :  { %143 = vpow2.f32 %v106_v47  ;;  %109 = vadd.xlane.f32.xlu0 %v108_v48 }
 0x18d   :  { %v144_v49 = vpop.eup %143 }
 0x18e   :  { %v111_v50 = vsel %vm95_vm5, %v144_v49, 0.0 }
 0x18f   :  { %112 = vadd.xlane.f32.xlu1 %v111_v50 }
 0x1fa   :  { %v110_v51 = vpop.xlane.xlu0 %109 }
 0x1fb   :  { %145 = vrcp.f32 %v110_v51 }
 0x201   :  { %v146_v52 = vpop.eup %145 }
 0x202   :  { %v116_v53 = vmul.f32 %v146_v52, %v142_v46  ;;  %v113_v54 = vpop.xlane.xlu1 %112 }
 0x203   :  { %147 = vrcp.f32 %v113_v54 }
 0x204   :  { %118 = vst.msk [vmem:[%s228_s5] sm:$0xff] %vm95_vm5, %v116_v53 }
 0x209   :  { %v148_v55 = vpop.eup %147 }
 0x20a   :  { %v117_v56 = vmul.f32 %v148_v55, %v144_v49 }
 0x20c   :  { %119 = vst.msk [vmem:[%s228_s5 + $0x8] sm:$0xff] %vm95_vm5, %v117_v56 }

</bundles_post_ra>
